<compile_context>
chip_gen: v6e
topology: v6e:2x2x1
jax: 0.10.0
libtpu: 0.0.40
codegen_flags: <defaults>
</compile_context>

<pallas_src>
import functools
import math

import jax
import jax.numpy as jnp
from jax import lax
from jax.experimental import pallas as pl
from jax.experimental.pallas import tpu as pltpu


def _round_up(x, m):
    return (x + m - 1) // m * m


# -----------------------------------------------------------------------------
# Pallas matmul + bias (hot path for the 'fc' layer)
# -----------------------------------------------------------------------------
def _matmul_bias_kernel_single(a_ref, b_ref, bias_ref, o_ref):
    acc = jnp.dot(a_ref[...], b_ref[...], preferred_element_type=jnp.float32)
    o_ref[...] = (acc + bias_ref[...].astype(jnp.float32)).astype(o_ref.dtype)


def _matmul_bias_kernel_tiled(a_ref, b_ref, bias_ref, o_ref, acc_ref):
    k = pl.program_id(2)

    @pl.when(k == 0)
    def _init():
        acc_ref[...] = jnp.zeros_like(acc_ref)

    acc_ref[...] += jnp.dot(a_ref[...], b_ref[...],
                            preferred_element_type=jnp.float32)

    @pl.when(k == pl.num_programs(2) - 1)
    def _finalize():
        o_ref[...] = (acc_ref[...] + bias_ref[...].astype(jnp.float32)
                      ).astype(o_ref.dtype)


def pallas_matmul_bias(a, b, bias, *, tm=512, tn=512, tk=1024, out_dtype=None):
    """out[M, N] = a[M, K] @ b[K, N] + bias[N]   (f32 accumulation on the MXU)."""
    M, K = a.shape
    K2, N = b.shape
    assert K == K2 and bias.shape == (N,)
    out_dtype = out_dtype or a.dtype
    bias2d = bias.reshape(1, N)

    # Clamp tiles to the problem; a block equal to the full dim is exempt from (8,128).
    tm, tn, tk = min(tm, M), min(tn, N), min(tk, K)

    if (tm, tn, tk) == (M, N, K):
        # Single-block fast path (used for the fc layer here): no padding inside, no K
        # grid axis, no accumulator scratch, resident bias, full-lane stores (the caller
        # pre-pads N to a multiple of 128 at construction time).
        ce = pl.CostEstimate(flops=2 * M * N * K, transcendentals=0,
                             bytes_accessed=4 * (M * K + K * N + M * N + N))
        vmem = 4 * (2 * M * K + 2 * K * N + 2 * M * N + 2 * N) + (4 << 20)
        return pl.pallas_call(
            _matmul_bias_kernel_single,
            out_shape=jax.ShapeDtypeStruct((M, N), out_dtype),
            grid_spec=pltpu.PrefetchScalarGridSpec(
                num_scalar_prefetch=0,
                grid=(1,),
                in_specs=[
                    pl.BlockSpec((M, K), lambda i: (0, 0)),
                    pl.BlockSpec((K, N), lambda i: (0, 0)),
                    pl.BlockSpec((1, N), lambda i: (0, 0)),
                ],
                out_specs=pl.BlockSpec((M, N), lambda i: (0, 0)),
            ),
            compiler_params=pltpu.CompilerParams(
                dimension_semantics=("arbitrary",),
                vmem_limit_bytes=int(min(max(vmem, 16 << 20), 64 << 20))),
            cost_estimate=ce,
        )(a, b, bias2d)

    # ---- General tiled path (not exercised by the small shapes in __main__). ----
    # Ragged K must be padded (a ragged K edge block would fold garbage into the
    # reduction).  Pad only to the 128 MXU granularity -- NOT to tk -- then shrink tk so
    # it divides the padded K (both stay multiples of 128).
    if K % 128:
        Kp = _round_up(K, 128)
        a = jnp.pad(a, ((0, 0), (0, Kp - K)))
        b = jnp.pad(b, ((0, Kp - K), (0, 0)))
        K = Kp
    if K % tk:
        tk = math.gcd(tk, K)

    # Ragged M / N use cdiv grids with ragged edge blocks: those blocks read unspecified
    # out-of-bounds rows/cols of A, B and bias, but the garbage only lands in
    # out-of-bounds output positions, which Pallas masks on writeback (K never ragged).
    grid = (pl.cdiv(M, tm), pl.cdiv(N, tn), K // tk)
    ce = pl.CostEstimate(flops=2 * M * N * K, transcendentals=0,
                         bytes_accessed=4 * (M * K + K * N + M * N + N))
    vmem = 4 * (2 * tm * tk + 2 * tk * tn + 2 * tm * tn + tm * tn + 2 * tn) + (8 << 20)
    # TODO(synk): optional bf16 operand cast (f32 accumulate) would roughly double MXU
    # throughput on v6e/v7x but changes numerics; kept f32 to match the PyTorch module.
    return pl.pallas_call(
        _matmul_bias_kernel_tiled,
        out_shape=jax.ShapeDtypeStruct((M, N), out_dtype),
        grid_spec=pltpu.PrefetchScalarGridSpec(
            num_scalar_prefetch=0,
            grid=grid,
            in_specs=[
                pl.BlockSpec((tm, tk), lambda i, j, k: (i, k)),
                pl.BlockSpec((tk, tn), lambda i, j, k: (k, j)),
                pl.BlockSpec((1, tn), lambda i, j, k: (0, j)),
            ],
            out_specs=pl.BlockSpec((tm, tn), lambda i, j, k: (i, j)),
            scratch_shapes=[pltpu.VMEM((tm, tn), jnp.float32)],
        ),
        compiler_params=pltpu.CompilerParams(
            dimension_semantics=("parallel", "parallel", "arbitrary"),
            vmem_limit_bytes=int(min(max(vmem, 16 << 20), 64 << 20))),
        cost_estimate=ce,
    )(a, b, bias2d)


# -----------------------------------------------------------------------------
# Pallas fused stride-1 conv2d (NCHW / OIHW): in-kernel padding + single MXU contraction
# -----------------------------------------------------------------------------
def _conv2d_s1_kernel(x_ref, w_ref, b_ref, o_ref, xpad_ref, patch_ref, *,
                      nb, C, H, W, KH, KW, ph, pw, Wpad, L):
    """One batch block of `nb` images, fully fused stride-1 conv.

    x_ref     : (nb, C, H*W)        unpadded images (free row-major flatten on host)
    w_ref     : (O, KH*KW*C)        w[o, (kh*KW+kw)*C + c] == W[o, c, kh, kw]  (resident)
    b_ref     : (O, 1)              bias column                                (resident)
    o_ref     : (nb, O, L)          L = Ho * Wpad  (lane-dense; junk cols sliced on host)
    xpad_ref  : (nb, C, Hpad*Wpad)  scratch: zero-padded image, built in-kernel
    patch_ref : (nb, KH*KW*C, L)    scratch: im2col patch stack, built in-kernel
    """
    w2d = w_ref[...]                                   # (O, KH*KW*C)
    bias = b_ref[...].astype(jnp.float32)              # (O, 1)

    # Border zeros every step (scratch persists across steps; with a 'parallel' grid
    # each core owns its own copy, so there is no safe "init only on step 0").
    xpad_ref[...] = jnp.zeros_like(xpad_ref)

    for i in range(nb):                                # static unroll: nb is small
        # 1) In-VMEM zero padding: copy each image row into the padded interior
        #    (no host-side jnp.pad -> activations are read from HBM exactly once).
        for h in range(H):
            dst = (h + ph) * Wpad + pw
            xpad_ref[i, :, dst:dst + W] = x_ref[i, :, h * W:(h + 1) * W]

        # 2) Build the im2col patch stack with single-row copies.  Row (kh*KW+kw)*C + c
        #    is the contiguous lane-offset window of channel c for tap (kh, kw); the row
        #    ordering matches the flattened weight layout.
        for kh in range(KH):
            for kw in range(KW):
                off = kh * Wpad + kw
                base = (kh * KW + kw) * C
                for c in range(C):
                    patch_ref[i, base + c:base + c + 1, :] = \
                        xpad_ref[i, c:c + 1, off:off + L]

        # 3) ONE MXU contraction per image: (O, KH*KW*C) @ (KH*KW*C, L), f32 accumulate,
        #    bias epilogue, cast only at the final store.
        acc = jnp.dot(w2d, patch_ref[i], preferred_element_type=jnp.float32)
        o_ref[i] = (acc + bias).astype(o_ref.dtype)


def pallas_conv2d_s1(x, w2d, bias_col, *, KH, KW, ph, pw, nb=None):
    """y = conv2d(x NCHW, W OIHW, stride=1, padding=(ph, pw)) + b via a fused Pallas kernel."""
    N, C, H, W = x.shape
    O = w2d.shape[0]
    Ho = H + 2 * ph - KH + 1
    Wo = W + 2 * pw - KW + 1
    Wpad = W + 2 * pw
    eh = 1 if KW > 1 else 0        # one extra zero row so the last window stays in-bounds
    Hpad = H + 2 * ph + eh
    Lin = Hpad * Wpad
    L = Ho * Wpad                   # lane-dense output width (junk cols sliced on host)
    KCC = KH * KW * C

    if nb is None:
        # Fold as many images per grid step as an ~8 MiB VMEM budget allows (amortizes
        # the ~0.35 us per-step overhead), but keep >= 2 grid steps when N >= 2 so both
        # v7x TensorCores get work under the 'parallel' dimension semantics.
        per_img = 4 * (2 * C * H * W + C * Lin + KCC * L + 2 * O * L)
        nb = max(1, min(N, (8 << 20) // max(per_img, 1)))
        if N >= 2:
            nb = min(nb, N // 2)
        while N % nb:
            nb -= 1
    grid = (N // nb,)

    xf = x.reshape(N, C, H * W)     # free row-major flatten, no pad, no extra HBM pass

    kernel = functools.partial(_conv2d_s1_kernel, nb=nb, C=C, H=H, W=W,
                               KH=KH, KW=KW, ph=ph, pw=pw, Wpad=Wpad, L=L)
    ce = pl.CostEstimate(
        flops=2 * N * O * L * KCC, transcendentals=0,
        bytes_accessed=4 * (N * C * H * W + O * KCC + O + N * O * L))
    vmem = 4 * nb * (2 * C * H * W + C * Lin + KCC * L + 2 * O * L) \
        + 8 * (O * KCC + O) + (4 << 20)

    out = pl.pallas_call(
        kernel,
        out_shape=jax.ShapeDtypeStruct((N, O, L), x.dtype),
        grid_spec=pltpu.PrefetchScalarGridSpec(
            num_scalar_prefetch=0,
            grid=grid,
            in_specs=[
                pl.BlockSpec((nb, C, H * W), lambda b: (b, 0, 0)),   # batch-block of images
                pl.BlockSpec((O, KCC), lambda b: (0, 0)),            # resident weights
                pl.BlockSpec((O, 1), lambda b: (0, 0)),              # resident bias
            ],
            out_specs=pl.BlockSpec((nb, O, L), lambda b: (b, 0, 0)),
            scratch_shapes=[
                pltpu.VMEM((nb, C, Lin), x.dtype),    # in-kernel zero-padded image
                pltpu.VMEM((nb, KCC, L), x.dtype),    # im2col patch stack
            ],
        ),
        compiler_params=pltpu.CompilerParams(
            dimension_semantics=("parallel",),
            vmem_limit_bytes=int(min(max(vmem, 16 << 20), 64 << 20))),
        cost_estimate=ce,
    )(xf, w2d, bias_col)

    # Row-major reshape is free; the column slice drops the (Wpad - Wo) junk columns
    # (the kernel computes them, which is cheaper than masking inside the kernel).
    return out.reshape(N, O, Ho, Wpad)[:, :, :, :Wo]


_matmul_bias_jit = jax.jit(pallas_matmul_bias,
                           static_argnames=("tm", "tn", "tk", "out_dtype"))
_conv2d_s1_jit = jax.jit(pallas_conv2d_s1,
                         static_argnames=("KH", "KW", "ph", "pw", "nb"))


# -----------------------------------------------------------------------------
# Wrapped modules (forward pass only; hot path runs inside Pallas)
# -----------------------------------------------------------------------------
class PallasLinear:
    """torch.nn.Linear equivalent: y = x @ W.T + b,  W: (out, in)."""

    def __init__(self, in_features, out_features, key):
        k1, k2 = jax.random.split(key)
        bound = 1.0 / math.sqrt(in_features)          # PyTorch default init bounds
        self.weight = jax.random.uniform(k1, (out_features, in_features),
                                         jnp.float32, -bound, bound)
        self.bias = jax.random.uniform(k2, (out_features,), jnp.float32,
                                       -bound, bound)
        self.out_features = out_features
        # Pad the output dim to a multiple of 128 ONCE so the kernel's stores are
        # full-lane unmasked vst; the slice back to out_features happens once outside.
        n_pad = _round_up(max(out_features, 1), 128)
        wt = jnp.transpose(self.weight)               # (in, out), transposed ONCE
        self.weight_t_pad = jnp.zeros((in_features, n_pad), jnp.float32
                                      ).at[:, :out_features].set(wt)
        self.bias_pad = jnp.zeros((n_pad,), jnp.float32).at[:out_features].set(self.bias)

    def __call__(self, x):
        y = _matmul_bias_jit(x, self.weight_t_pad, self.bias_pad)
        return y[:, :self.out_features]


class PallasConv2d:
    """torch.nn.Conv2d equivalent (NCHW / OIHW) via a fused Pallas conv kernel."""

    def __init__(self, in_ch, out_ch, kernel_size, stride, padding, key):
        kh = kw = kernel_size
        k1, k2 = jax.random.split(key)
        fan_in = in_ch * kh * kw
        bound = 1.0 / math.sqrt(fan_in)
        self.weight = jax.random.uniform(k1, (out_ch, in_ch, kh, kw),
                                         jnp.float32, -bound, bound)
        self.bias = jax.random.uniform(k2, (out_ch,), jnp.float32, -bound, bound)
        self.stride = (stride, stride)
        self.padding = (padding, padding)
        # Pre-flattened weights, ONCE: w2d[o, (kh*KW+kw)*C + c] = W[o, c, kh, kw]
        self.w2d = jnp.transpose(self.weight, (0, 2, 3, 1)).reshape(
            out_ch, kh * kw * in_ch)
        self.bias_col = self.bias.reshape(out_ch, 1)

    def __call__(self, x):
        sh, sw = self.stride
        ph, pw = self.padding
        O, C, KH, KW = self.weight.shape
        if (sh, sw) == (1, 1):
            return _conv2d_s1_jit(x, self.w2d, self.bias_col,
                                  KH=KH, KW=KW, ph=ph, pw=pw)
        # TODO(synk): strided conv has no fused Pallas path here; fall back to XLA conv.
        y = lax.conv_general_dilated(
            x, self.weight, window_strides=(sh, sw),
            padding=[(ph, ph), (pw, pw)],
            dimension_numbers=('NCHW', 'OIHW', 'NCHW'))
        return y + self.bias[None, :, None, None]


# -----------------------------------------------------------------------------
# Layer_wrapper equivalent (forward pass)
# -----------------------------------------------------------------------------
class LayerWrapperPallas:
    def __init__(self, module, layer_type, dim, train_mode, angle_mea=True,
                 stride=None, padding=None, key=None):
        self.module = module
        self.scale = 1
        self.layer_type = layer_type
        self.stride = stride
        self.padding = padding
        self.output_grad = None
        self.x_shape = None
        self.train_mode = train_mode
        self.angle_mea = angle_mea
        self.cossim = jnp.zeros((1,), jnp.float32)

        key = key if key is not None else jax.random.PRNGKey(42)
        if train_mode in ('FA', 'BFA', 'Sign_symmetry_magnitude_uniform'):
            self.fixed_fb_weights = self._kaiming_uniform(dim, key)
        elif train_mode == 'Sign_symmetry_magnitude_normal':
            self.fixed_fb_weights = self._kaiming_normal(dim, key)
        elif train_mode in ('Sign_symmetry_only_sign', 'uniform-signsym-feedback-SN'):
            self.fixed_fb_weights = jnp.sign(module.weight)
        else:
            raise NameError('No {} supported for wrapper'.format(train_mode))

    @staticmethod
    def _fan_in(dim):
        if len(dim) == 2:
            return dim[1]
        return dim[1] * dim[2] * dim[3]

    def _kaiming_uniform(self, dim, key):
        bound = math.sqrt(6.0 / self._fan_in(dim))
        return jax.random.uniform(key, tuple(dim), jnp.float32, -bound, bound)

    def _kaiming_normal(self, dim, key):
        std = math.sqrt(2.0 / self._fan_in(dim))
        return std * jax.random.normal(key, tuple(dim), jnp.float32)

    def __call__(self, x):
        # Inference-path forward: hooks only alter the backward pass.
        # TODO(synk): backward feedback-alignment hooks (FA_hook_pre/post, Angle_hook)
        # would need a jax.custom_vjp; only the forward is implemented here.
        self.x_shape = x.shape
        return self.module(x)


# -----------------------------------------------------------------------------
# Pure-JAX references for verification
# -----------------------------------------------------------------------------
def _linear_ref(x, w, b):
    return x @ w.T + b


def _conv_ref(x, w, b, stride, padding):
    ph, pw = padding
    y = lax.conv_general_dilated(
        x, w, window_strides=stride, padding=[(ph, ph), (pw, pw)],
        dimension_numbers=('NCHW', 'OIHW', 'NCHW'))
    return y + b[None, :, None, None]


if __name__ == "__main__":
    root = jax.random.PRNGKey(0)
    k_convw, k_fcw, k_xc, k_xf, k_fb1, k_fb2 = jax.random.split(root, 6)

    # ---- conv case: Conv2d(4, 8, 3, stride=1, padding=1), x: (2, 4, 16, 16) ----
    conv = PallasConv2d(4, 8, kernel_size=3, stride=1, padding=1, key=k_convw)
    conv_wrap = LayerWrapperPallas(conv, layer_type='conv', dim=(8, 4, 3, 3),
                                   train_mode='FA', angle_mea=True,
                                   stride=(1, 1), padding=(1, 1), key=k_fb1)
    x_conv = jax.random.normal(k_xc, (2, 4, 16, 16), jnp.float32)
    y_conv = jax.block_until_ready(conv_wrap(x_conv))
    y_conv_ref = _conv_ref(x_conv, conv.weight, conv.bias, (1, 1), (1, 1))
    assert y_conv.shape == (2, 8, 16, 16)
    assert jnp.allclose(y_conv, y_conv_ref, atol=1e-4, rtol=1e-4), \
        float(jnp.max(jnp.abs(y_conv - y_conv_ref)))

    # ---- fc case: Linear(32, 16), x: (8, 32) ----
    fc = PallasLinear(32, 16, key=k_fcw)
    fc_wrap = LayerWrapperPallas(fc, layer_type='fc', dim=(16, 32),
                                 train_mode='FA', angle_mea=True, key=k_fb2)
    x_fc = jax.random.normal(k_xf, (8, 32), jnp.float32)
    y_fc = jax.block_until_ready(fc_wrap(x_fc))
    y_fc_ref = _linear_ref(x_fc, fc.weight, fc.bias)
    assert y_fc.shape == (8, 16)
    assert jnp.allclose(y_fc, y_fc_ref, atol=1e-4, rtol=1e-4), \
        float(jnp.max(jnp.abs(y_fc - y_fc_ref)))

    print("KERNEL_OK")
</pallas_src>

<mosaic_0001>
module attributes {stable_mosaic.version = 11 : i64} {
  func.func @_conv2d_s1_kernel(%arg0: i32, %arg1: memref<1x4x256xf32, #tpu.memory_space<vmem>>, %arg2: memref<8x36xf32, #tpu.memory_space<vmem>>, %arg3: memref<8x1xf32, #tpu.memory_space<vmem>>, %arg4: memref<1x8x288xf32, #tpu.memory_space<vmem>>, %arg5: memref<1x4x342xf32, #tpu.memory_space<vmem>>, %arg6: memref<1x36x288xf32, #tpu.memory_space<vmem>>) attributes {dimension_semantics = [#tpu.dimension_semantics<parallel>], iteration_bounds = array<i64: 2>, scalar_prefetch = 0 : i64, scratch_operands = 2 : i64, tpu.core_type = #tpu.core_type<tc>, window_params = [{transform_indices = @transform_0, window_bounds = array<i64: 1, 4, 256>}, {pipeline_mode = #tpu.pipeline_mode<synchronous>, transform_indices = @transform_1, window_bounds = array<i64: 8, 36>}, {pipeline_mode = #tpu.pipeline_mode<synchronous>, transform_indices = @transform_2, window_bounds = array<i64: 8, 1>}, {transform_indices = @transform_3, window_bounds = array<i64: 1, 8, 288>}]} {
    %c0 = arith.constant 0 : index
    %c0_0 = arith.constant 0 : index
    %0 = vector.load %arg2[%c0, %c0_0] : memref<8x36xf32, #tpu.memory_space<vmem>>, vector<8x36xf32>
    %c0_1 = arith.constant 0 : index
    %c0_2 = arith.constant 0 : index
    %1 = vector.load %arg3[%c0_1, %c0_2] : memref<8x1xf32, #tpu.memory_space<vmem>>, vector<8x1xf32>
    %cst = arith.constant 0.000000e+00 : f32
    %2 = vector.broadcast %cst : f32 to vector<1x4x342xf32>
    %c0_3 = arith.constant 0 : index
    %c0_4 = arith.constant 0 : index
    %c0_5 = arith.constant 0 : index
    %3 = vector.load %arg5[%c0_3, %c0_4, %c0_5] : memref<1x4x342xf32, #tpu.memory_space<vmem>>, vector<1x4x342xf32>
    tpu.vector_store %arg5[%c0_3, %c0_4, %c0_5], %2 {strides = array<i32>} : memref<1x4x342xf32, #tpu.memory_space<vmem>>, vector<1x4x342xf32>,
    %c0_6 = arith.constant 0 : index
    %c0_7 = arith.constant 0 : index
    %c0_8 = arith.constant 0 : index
    %4 = vector.load %arg1[%c0_6, %c0_7, %c0_8] : memref<1x4x256xf32, #tpu.memory_space<vmem>>, vector<1x4x16xf32>
    %5 = vector.shape_cast %4 : vector<1x4x16xf32> to vector<4x16xf32>
    %c0_9 = arith.constant 0 : index
    %c0_10 = arith.constant 0 : index
    %c19 = arith.constant 19 : index
    %6 = vector.load %arg5[%c0_9, %c0_10, %c19] : memref<1x4x342xf32, #tpu.memory_space<vmem>>, vector<1x4x16xf32>
    %7 = vector.shape_cast %6 : vector<1x4x16xf32> to vector<4x16xf32>
    %8 = vector.shape_cast %5 : vector<4x16xf32> to vector<1x4x16xf32>
    tpu.vector_store %arg5[%c0_9, %c0_10, %c19], %8 {strides = array<i32>} : memref<1x4x342xf32, #tpu.memory_space<vmem>>, vector<1x4x16xf32>,
    %c0_11 = arith.constant 0 : index
    %c0_12 = arith.constant 0 : index
    %c16 = arith.constant 16 : index
    %9 = vector.load %arg1[%c0_11, %c0_12, %c16] : memref<1x4x256xf32, #tpu.memory_space<vmem>>, vector<1x4x16xf32>
    %10 = vector.shape_cast %9 : vector<1x4x16xf32> to vector<4x16xf32>
    %c0_13 = arith.constant 0 : index
    %c0_14 = arith.constant 0 : index
    %c37 = arith.constant 37 : index
    %11 = vector.load %arg5[%c0_13, %c0_14, %c37] : memref<1x4x342xf32, #tpu.memory_space<vmem>>, vector<1x4x16xf32>
    %12 = vector.shape_cast %11 : vector<1x4x16xf32> to vector<4x16xf32>
    %13 = vector.shape_cast %10 : vector<4x16xf32> to vector<1x4x16xf32>
    tpu.vector_store %arg5[%c0_13, %c0_14, %c37], %13 {strides = array<i32>} : memref<1x4x342xf32, #tpu.memory_space<vmem>>, vector<1x4x16xf32>,
    %c0_15 = arith.constant 0 : index
    %c0_16 = arith.constant 0 : index
    %c32 = arith.constant 32 : index
    %14 = vector.load %arg1[%c0_15, %c0_16, %c32] : memref<1x4x256xf32, #tpu.memory_space<vmem>>, vector<1x4x16xf32>
    %15 = vector.shape_cast %14 : vector<1x4x16xf32> to vector<4x16xf32>
    %c0_17 = arith.constant 0 : index
    %c0_18 = arith.constant 0 : index
    %c55 = arith.constant 55 : index
    %16 = vector.load %arg5[%c0_17, %c0_18, %c55] : memref<1x4x342xf32, #tpu.memory_space<vmem>>, vector<1x4x16xf32>
    %17 = vector.shape_cast %16 : vector<1x4x16xf32> to vector<4x16xf32>
    %18 = vector.shape_cast %15 : vector<4x16xf32> to vector<1x4x16xf32>
    tpu.vector_store %arg5[%c0_17, %c0_18, %c55], %18 {strides = array<i32>} : memref<1x4x342xf32, #tpu.memory_space<vmem>>, vector<1x4x16xf32>,
    %c0_19 = arith.constant 0 : index
    %c0_20 = arith.constant 0 : index
    %c48 = arith.constant 48 : index
    %19 = vector.load %arg1[%c0_19, %c0_20, %c48] : memref<1x4x256xf32, #tpu.memory_space<vmem>>, vector<1x4x16xf32>
    %20 = vector.shape_cast %19 : vector<1x4x16xf32> to vector<4x16xf32>
    %c0_21 = arith.constant 0 : index
    %c0_22 = arith.constant 0 : index
    %c73 = arith.constant 73 : index
    %21 = vector.load %arg5[%c0_21, %c0_22, %c73] : memref<1x4x342xf32, #tpu.memory_space<vmem>>, vector<1x4x16xf32>
    %22 = vector.shape_cast %21 : vector<1x4x16xf32> to vector<4x16xf32>
    %23 = vector.shape_cast %20 : vector<4x16xf32> to vector<1x4x16xf32>
    tpu.vector_store %arg5[%c0_21, %c0_22, %c73], %23 {strides = array<i32>} : memref<1x4x342xf32, #tpu.memory_space<vmem>>, vector<1x4x16xf32>,
    %c0_23 = arith.constant 0 : index
    %c0_24 = arith.constant 0 : index
    %c64 = arith.constant 64 : index
    %24 = vector.load %arg1[%c0_23, %c0_24, %c64] : memref<1x4x256xf32, #tpu.memory_space<vmem>>, vector<1x4x16xf32>
    %25 = vector.shape_cast %24 : vector<1x4x16xf32> to vector<4x16xf32>
    %c0_25 = arith.constant 0 : index
    %c0_26 = arith.constant 0 : index
    %c91 = arith.constant 91 : index
    %26 = vector.load %arg5[%c0_25, %c0_26, %c91] : memref<1x4x342xf32, #tpu.memory_space<vmem>>, vector<1x4x16xf32>
    %27 = vector.shape_cast %26 : vector<1x4x16xf32> to vector<4x16xf32>
    %28 = vector.shape_cast %25 : vector<4x16xf32> to vector<1x4x16xf32>
    tpu.vector_store %arg5[%c0_25, %c0_26, %c91], %28 {strides = array<i32>} : memref<1x4x342xf32, #tpu.memory_space<vmem>>, vector<1x4x16xf32>,
    %c0_27 = arith.constant 0 : index
    %c0_28 = arith.constant 0 : index
    %c80 = arith.constant 80 : index
    %29 = vector.load %arg1[%c0_27, %c0_28, %c80] : memref<1x4x256xf32, #tpu.memory_space<vmem>>, vector<1x4x16xf32>
    %30 = vector.shape_cast %29 : vector<1x4x16xf32> to vector<4x16xf32>
    %c0_29 = arith.constant 0 : index
    %c0_30 = arith.constant 0 : index
    %c109 = arith.constant 109 : index
    %31 = vector.load %arg5[%c0_29, %c0_30, %c109] : memref<1x4x342xf32, #tpu.memory_space<vmem>>, vector<1x4x16xf32>
    %32 = vector.shape_cast %31 : vector<1x4x16xf32> to vector<4x16xf32>
    %33 = vector.shape_cast %30 : vector<4x16xf32> to vector<1x4x16xf32>
    tpu.vector_store %arg5[%c0_29, %c0_30, %c109], %33 {strides = array<i32>} : memref<1x4x342xf32, #tpu.memory_space<vmem>>, vector<1x4x16xf32>,
    %c0_31 = arith.constant 0 : index
    %c0_32 = arith.constant 0 : index
    %c96 = arith.constant 96 : index
    %34 = vector.load %arg1[%c0_31, %c0_32, %c96] : memref<1x4x256xf32, #tpu.memory_space<vmem>>, vector<1x4x16xf32>
    %35 = vector.shape_cast %34 : vector<1x4x16xf32> to vector<4x16xf32>
    %c0_33 = arith.constant 0 : index
    %c0_34 = arith.constant 0 : index
    %c127 = arith.constant 127 : index
    %36 = vector.load %arg5[%c0_33, %c0_34, %c127] : memref<1x4x342xf32, #tpu.memory_space<vmem>>, vector<1x4x16xf32>
    %37 = vector.shape_cast %36 : vector<1x4x16xf32> to vector<4x16xf32>
    %38 = vector.shape_cast %35 : vector<4x16xf32> to vector<1x4x16xf32>
    tpu.vector_store %arg5[%c0_33, %c0_34, %c127], %38 {strides = array<i32>} : memref<1x4x342xf32, #tpu.memory_space<vmem>>, vector<1x4x16xf32>,
    %c0_35 = arith.constant 0 : index
    %c0_36 = arith.constant 0 : index
    %c112 = arith.constant 112 : index
    %39 = vector.load %arg1[%c0_35, %c0_36, %c112] : memref<1x4x256xf32, #tpu.memory_space<vmem>>, vector<1x4x16xf32>
    %40 = vector.shape_cast %39 : vector<1x4x16xf32> to vector<4x16xf32>
    %c0_37 = arith.constant 0 : index
    %c0_38 = arith.constant 0 : index
    %c145 = arith.constant 145 : index
    %41 = vector.load %arg5[%c0_37, %c0_38, %c145] : memref<1x4x342xf32, #tpu.memory_space<vmem>>, vector<1x4x16xf32>
    %42 = vector.shape_cast %41 : vector<1x4x16xf32> to vector<4x16xf32>
    %43 = vector.shape_cast %40 : vector<4x16xf32> to vector<1x4x16xf32>
    tpu.vector_store %arg5[%c0_37, %c0_38, %c145], %43 {strides = array<i32>} : memref<1x4x342xf32, #tpu.memory_space<vmem>>, vector<1x4x16xf32>,
    %c0_39 = arith.constant 0 : index
    %c0_40 = arith.constant 0 : index
    %c128 = arith.constant 128 : index
    %44 = vector.load %arg1[%c0_39, %c0_40, %c128] : memref<1x4x256xf32, #tpu.memory_space<vmem>>, vector<1x4x16xf32>
    %45 = vector.shape_cast %44 : vector<1x4x16xf32> to vector<4x16xf32>
    %c0_41 = arith.constant 0 : index
    %c0_42 = arith.constant 0 : index
    %c163 = arith.constant 163 : index
    %46 = vector.load %arg5[%c0_41, %c0_42, %c163] : memref<1x4x342xf32, #tpu.memory_space<vmem>>, vector<1x4x16xf32>
    %47 = vector.shape_cast %46 : vector<1x4x16xf32> to vector<4x16xf32>
    %48 = vector.shape_cast %45 : vector<4x16xf32> to vector<1x4x16xf32>
    tpu.vector_store %arg5[%c0_41, %c0_42, %c163], %48 {strides = array<i32>} : memref<1x4x342xf32, #tpu.memory_space<vmem>>, vector<1x4x16xf32>,
    %c0_43 = arith.constant 0 : index
    %c0_44 = arith.constant 0 : index
    %c144 = arith.constant 144 : index
    %49 = vector.load %arg1[%c0_43, %c0_44, %c144] : memref<1x4x256xf32, #tpu.memory_space<vmem>>, vector<1x4x16xf32>
    %50 = vector.shape_cast %49 : vector<1x4x16xf32> to vector<4x16xf32>
    %c0_45 = arith.constant 0 : index
    %c0_46 = arith.constant 0 : index
    %c181 = arith.constant 181 : index
    %51 = vector.load %arg5[%c0_45, %c0_46, %c181] : memref<1x4x342xf32, #tpu.memory_space<vmem>>, vector<1x4x16xf32>
    %52 = vector.shape_cast %51 : vector<1x4x16xf32> to vector<4x16xf32>
    %53 = vector.shape_cast %50 : vector<4x16xf32> to vector<1x4x16xf32>
    tpu.vector_store %arg5[%c0_45, %c0_46, %c181], %53 {strides = array<i32>} : memref<1x4x342xf32, #tpu.memory_space<vmem>>, vector<1x4x16xf32>,
    %c0_47 = arith.constant 0 : index
    %c0_48 = arith.constant 0 : index
    %c160 = arith.constant 160 : index
    %54 = vector.load %arg1[%c0_47, %c0_48, %c160] : memref<1x4x256xf32, #tpu.memory_space<vmem>>, vector<1x4x16xf32>
    %55 = vector.shape_cast %54 : vector<1x4x16xf32> to vector<4x16xf32>
    %c0_49 = arith.constant 0 : index
    %c0_50 = arith.constant 0 : index
    %c199 = arith.constant 199 : index
    %56 = vector.load %arg5[%c0_49, %c0_50, %c199] : memref<1x4x342xf32, #tpu.memory_space<vmem>>, vector<1x4x16xf32>
    %57 = vector.shape_cast %56 : vector<1x4x16xf32> to vector<4x16xf32>
    %58 = vector.shape_cast %55 : vector<4x16xf32> to vector<1x4x16xf32>
    tpu.vector_store %arg5[%c0_49, %c0_50, %c199], %58 {strides = array<i32>} : memref<1x4x342xf32, #tpu.memory_space<vmem>>, vector<1x4x16xf32>,
    %c0_51 = arith.constant 0 : index
    %c0_52 = arith.constant 0 : index
    %c176 = arith.constant 176 : index
    %59 = vector.load %arg1[%c0_51, %c0_52, %c176] : memref<1x4x256xf32, #tpu.memory_space<vmem>>, vector<1x4x16xf32>
    %60 = vector.shape_cast %59 : vector<1x4x16xf32> to vector<4x16xf32>
    %c0_53 = arith.constant 0 : index
    %c0_54 = arith.constant 0 : index
    %c217 = arith.constant 217 : index
    %61 = vector.load %arg5[%c0_53, %c0_54, %c217] : memref<1x4x342xf32, #tpu.memory_space<vmem>>, vector<1x4x16xf32>
    %62 = vector.shape_cast %61 : vector<1x4x16xf32> to vector<4x16xf32>
    %63 = vector.shape_cast %60 : vector<4x16xf32> to vector<1x4x16xf32>
    tpu.vector_store %arg5[%c0_53, %c0_54, %c217], %63 {strides = array<i32>} : memref<1x4x342xf32, #tpu.memory_space<vmem>>, vector<1x4x16xf32>,
    %c0_55 = arith.constant 0 : index
    %c0_56 = arith.constant 0 : index
    %c192 = arith.constant 192 : index
    %64 = vector.load %arg1[%c0_55, %c0_56, %c192] : memref<1x4x256xf32, #tpu.memory_space<vmem>>, vector<1x4x16xf32>
    %65 = vector.shape_cast %64 : vector<1x4x16xf32> to vector<4x16xf32>
    %c0_57 = arith.constant 0 : index
    %c0_58 = arith.constant 0 : index
    %c235 = arith.constant 235 : index
    %66 = vector.load %arg5[%c0_57, %c0_58, %c235] : memref<1x4x342xf32, #tpu.memory_space<vmem>>, vector<1x4x16xf32>
    %67 = vector.shape_cast %66 : vector<1x4x16xf32> to vector<4x16xf32>
    %68 = vector.shape_cast %65 : vector<4x16xf32> to vector<1x4x16xf32>
    tpu.vector_store %arg5[%c0_57, %c0_58, %c235], %68 {strides = array<i32>} : memref<1x4x342xf32, #tpu.memory_space<vmem>>, vector<1x4x16xf32>,
    %c0_59 = arith.constant 0 : index
    %c0_60 = arith.constant 0 : index
    %c208 = arith.constant 208 : index
    %69 = vector.load %arg1[%c0_59, %c0_60, %c208] : memref<1x4x256xf32, #tpu.memory_space<vmem>>, vector<1x4x16xf32>
    %70 = vector.shape_cast %69 : vector<1x4x16xf32> to vector<4x16xf32>
    %c0_61 = arith.constant 0 : index
    %c0_62 = arith.constant 0 : index
    %c253 = arith.constant 253 : index
    %71 = vector.load %arg5[%c0_61, %c0_62, %c253] : memref<1x4x342xf32, #tpu.memory_space<vmem>>, vector<1x4x16xf32>
    %72 = vector.shape_cast %71 : vector<1x4x16xf32> to vector<4x16xf32>
    %73 = vector.shape_cast %70 : vector<4x16xf32> to vector<1x4x16xf32>
    tpu.vector_store %arg5[%c0_61, %c0_62, %c253], %73 {strides = array<i32>} : memref<1x4x342xf32, #tpu.memory_space<vmem>>, vector<1x4x16xf32>,
    %c0_63 = arith.constant 0 : index
    %c0_64 = arith.constant 0 : index
    %c224 = arith.constant 224 : index
    %74 = vector.load %arg1[%c0_63, %c0_64, %c224] : memref<1x4x256xf32, #tpu.memory_space<vmem>>, vector<1x4x16xf32>
    %75 = vector.shape_cast %74 : vector<1x4x16xf32> to vector<4x16xf32>
    %c0_65 = arith.constant 0 : index
    %c0_66 = arith.constant 0 : index
    %c271 = arith.constant 271 : index
    %76 = vector.load %arg5[%c0_65, %c0_66, %c271] : memref<1x4x342xf32, #tpu.memory_space<vmem>>, vector<1x4x16xf32>
    %77 = vector.shape_cast %76 : vector<1x4x16xf32> to vector<4x16xf32>
    %78 = vector.shape_cast %75 : vector<4x16xf32> to vector<1x4x16xf32>
    tpu.vector_store %arg5[%c0_65, %c0_66, %c271], %78 {strides = array<i32>} : memref<1x4x342xf32, #tpu.memory_space<vmem>>, vector<1x4x16xf32>,
    %c0_67 = arith.constant 0 : index
    %c0_68 = arith.constant 0 : index
    %c240 = arith.constant 240 : index
    %79 = vector.load %arg1[%c0_67, %c0_68, %c240] : memref<1x4x256xf32, #tpu.memory_space<vmem>>, vector<1x4x16xf32>
    %80 = vector.shape_cast %79 : vector<1x4x16xf32> to vector<4x16xf32>
    %c0_69 = arith.constant 0 : index
    %c0_70 = arith.constant 0 : index
    %c289 = arith.constant 289 : index
    %81 = vector.load %arg5[%c0_69, %c0_70, %c289] : memref<1x4x342xf32, #tpu.memory_space<vmem>>, vector<1x4x16xf32>
    %82 = vector.shape_cast %81 : vector<1x4x16xf32> to vector<4x16xf32>
    %83 = vector.shape_cast %80 : vector<4x16xf32> to vector<1x4x16xf32>
    tpu.vector_store %arg5[%c0_69, %c0_70, %c289], %83 {strides = array<i32>} : memref<1x4x342xf32, #tpu.memory_space<vmem>>, vector<1x4x16xf32>,
    %c0_71 = arith.constant 0 : index
    %c0_72 = arith.constant 0 : index
    %c0_73 = arith.constant 0 : index
    %84 = vector.load %arg5[%c0_71, %c0_72, %c0_73] : memref<1x4x342xf32, #tpu.memory_space<vmem>>, vector<1x1x288xf32>
    %85 = vector.shape_cast %84 : vector<1x1x288xf32> to vector<1x288xf32>
    %c0_74 = arith.constant 0 : index
    %c0_75 = arith.constant 0 : index
    %c0_76 = arith.constant 0 : index
    %86 = vector.load %arg6[%c0_74, %c0_75, %c0_76] : memref<1x36x288xf32, #tpu.memory_space<vmem>>, vector<1x1x288xf32>
    %87 = vector.shape_cast %86 : vector<1x1x288xf32> to vector<1x288xf32>
    %88 = vector.shape_cast %85 : vector<1x288xf32> to vector<1x1x288xf32>
    tpu.vector_store %arg6[%c0_74, %c0_75, %c0_76], %88 {strides = array<i32>} : memref<1x36x288xf32, #tpu.memory_space<vmem>>, vector<1x1x288xf32>,
    %c0_77 = arith.constant 0 : index
    %c1 = arith.constant 1 : index
    %c0_78 = arith.constant 0 : index
    %89 = vector.load %arg5[%c0_77, %c1, %c0_78] : memref<1x4x342xf32, #tpu.memory_space<vmem>>, vector<1x1x288xf32>
    %90 = vector.shape_cast %89 : vector<1x1x288xf32> to vector<1x288xf32>
    %c0_79 = arith.constant 0 : index
    %c1_80 = arith.constant 1 : index
    %c0_81 = arith.constant 0 : index
    %91 = vector.load %arg6[%c0_79, %c1_80, %c0_81] : memref<1x36x288xf32, #tpu.memory_space<vmem>>, vector<1x1x288xf32>
    %92 = vector.shape_cast %91 : vector<1x1x288xf32> to vector<1x288xf32>
    %93 = vector.shape_cast %90 : vector<1x288xf32> to vector<1x1x288xf32>
    tpu.vector_store %arg6[%c0_79, %c1_80, %c0_81], %93 {strides = array<i32>} : memref<1x36x288xf32, #tpu.memory_space<vmem>>, vector<1x1x288xf32>,
    %c0_82 = arith.constant 0 : index
    %c2 = arith.constant 2 : index
    %c0_83 = arith.constant 0 : index
    %94 = vector.load %arg5[%c0_82, %c2, %c0_83] : memref<1x4x342xf32, #tpu.memory_space<vmem>>, vector<1x1x288xf32>
    %95 = vector.shape_cast %94 : vector<1x1x288xf32> to vector<1x288xf32>
    %c0_84 = arith.constant 0 : index
    %c2_85 = arith.constant 2 : index
    %c0_86 = arith.constant 0 : index
    %96 = vector.load %arg6[%c0_84, %c2_85, %c0_86] : memref<1x36x288xf32, #tpu.memory_space<vmem>>, vector<1x1x288xf32>
    %97 = vector.shape_cast %96 : vector<1x1x288xf32> to vector<1x288xf32>
    %98 = vector.shape_cast %95 : vector<1x288xf32> to vector<1x1x288xf32>
    tpu.vector_store %arg6[%c0_84, %c2_85, %c0_86], %98 {strides = array<i32>} : memref<1x36x288xf32, #tpu.memory_space<vmem>>, vector<1x1x288xf32>,
    %c0_87 = arith.constant 0 : index
    %c3 = arith.constant 3 : index
    %c0_88 = arith.constant 0 : index
    %99 = vector.load %arg5[%c0_87, %c3, %c0_88] : memref<1x4x342xf32, #tpu.memory_space<vmem>>, vector<1x1x288xf32>
    %100 = vector.shape_cast %99 : vector<1x1x288xf32> to vector<1x288xf32>
    %c0_89 = arith.constant 0 : index
    %c3_90 = arith.constant 3 : index
    %c0_91 = arith.constant 0 : index
    %101 = vector.load %arg6[%c0_89, %c3_90, %c0_91] : memref<1x36x288xf32, #tpu.memory_space<vmem>>, vector<1x1x288xf32>
    %102 = vector.shape_cast %101 : vector<1x1x288xf32> to vector<1x288xf32>
    %103 = vector.shape_cast %100 : vector<1x288xf32> to vector<1x1x288xf32>
    tpu.vector_store %arg6[%c0_89, %c3_90, %c0_91], %103 {strides = array<i32>} : memref<1x36x288xf32, #tpu.memory_space<vmem>>, vector<1x1x288xf32>,
    %c0_92 = arith.constant 0 : index
    %c0_93 = arith.constant 0 : index
    %c1_94 = arith.constant 1 : index
    %104 = vector.load %arg5[%c0_92, %c0_93, %c1_94] : memref<1x4x342xf32, #tpu.memory_space<vmem>>, vector<1x1x288xf32>
    %105 = vector.shape_cast %104 : vector<1x1x288xf32> to vector<1x288xf32>
    %c0_95 = arith.constant 0 : index
    %c4 = arith.constant 4 : index
    %c0_96 = arith.constant 0 : index
    %106 = vector.load %arg6[%c0_95, %c4, %c0_96] : memref<1x36x288xf32, #tpu.memory_space<vmem>>, vector<1x1x288xf32>
    %107 = vector.shape_cast %106 : vector<1x1x288xf32> to vector<1x288xf32>
    %108 = vector.shape_cast %105 : vector<1x288xf32> to vector<1x1x288xf32>
    tpu.vector_store %arg6[%c0_95, %c4, %c0_96], %108 {strides = array<i32>} : memref<1x36x288xf32, #tpu.memory_space<vmem>>, vector<1x1x288xf32>,
    %c0_97 = arith.constant 0 : index
    %c1_98 = arith.constant 1 : index
    %c1_99 = arith.constant 1 : index
    %109 = vector.load %arg5[%c0_97, %c1_98, %c1_99] : memref<1x4x342xf32, #tpu.memory_space<vmem>>, vector<1x1x288xf32>
    %110 = vector.shape_cast %109 : vector<1x1x288xf32> to vector<1x288xf32>
    %c0_100 = arith.constant 0 : index
    %c5 = arith.constant 5 : index
    %c0_101 = arith.constant 0 : index
    %111 = vector.load %arg6[%c0_100, %c5, %c0_101] : memref<1x36x288xf32, #tpu.memory_space<vmem>>, vector<1x1x288xf32>
    %112 = vector.shape_cast %111 : vector<1x1x288xf32> to vector<1x288xf32>
    %113 = vector.shape_cast %110 : vector<1x288xf32> to vector<1x1x288xf32>
    tpu.vector_store %arg6[%c0_100, %c5, %c0_101], %113 {strides = array<i32>} : memref<1x36x288xf32, #tpu.memory_space<vmem>>, vector<1x1x288xf32>,
    %c0_102 = arith.constant 0 : index
    %c2_103 = arith.constant 2 : index
    %c1_104 = arith.constant 1 : index
    %114 = vector.load %arg5[%c0_102, %c2_103, %c1_104] : memref<1x4x342xf32, #tpu.memory_space<vmem>>, vector<1x1x288xf32>
    %115 = vector.shape_cast %114 : vector<1x1x288xf32> to vector<1x288xf32>
    %c0_105 = arith.constant 0 : index
    %c6 = arith.constant 6 : index
    %c0_106 = arith.constant 0 : index
    %116 = vector.load %arg6[%c0_105, %c6, %c0_106] : memref<1x36x288xf32, #tpu.memory_space<vmem>>, vector<1x1x288xf32>
    %117 = vector.shape_cast %116 : vector<1x1x288xf32> to vector<1x288xf32>
    %118 = vector.shape_cast %115 : vector<1x288xf32> to vector<1x1x288xf32>
    tpu.vector_store %arg6[%c0_105, %c6, %c0_106], %118 {strides = array<i32>} : memref<1x36x288xf32, #tpu.memory_space<vmem>>, vector<1x1x288xf32>,
    %c0_107 = arith.constant 0 : index
    %c3_108 = arith.constant 3 : index
    %c1_109 = arith.constant 1 : index
    %119 = vector.load %arg5[%c0_107, %c3_108, %c1_109] : memref<1x4x342xf32, #tpu.memory_space<vmem>>, vector<1x1x288xf32>
    %120 = vector.shape_cast %119 : vector<1x1x288xf32> to vector<1x288xf32>
    %c0_110 = arith.constant 0 : index
    %c7 = arith.constant 7 : index
    %c0_111 = arith.constant 0 : index
    %121 = vector.load %arg6[%c0_110, %c7, %c0_111] : memref<1x36x288xf32, #tpu.memory_space<vmem>>, vector<1x1x288xf32>
    %122 = vector.shape_cast %121 : vector<1x1x288xf32> to vector<1x288xf32>
    %123 = vector.shape_cast %120 : vector<1x288xf32> to vector<1x1x288xf32>
    tpu.vector_store %arg6[%c0_110, %c7, %c0_111], %123 {strides = array<i32>} : memref<1x36x288xf32, #tpu.memory_space<vmem>>, vector<1x1x288xf32>,
    %c0_112 = arith.constant 0 : index
    %c0_113 = arith.constant 0 : index
    %c2_114 = arith.constant 2 : index
    %124 = vector.load %arg5[%c0_112, %c0_113, %c2_114] : memref<1x4x342xf32, #tpu.memory_space<vmem>>, vector<1x1x288xf32>
    %125 = vector.shape_cast %124 : vector<1x1x288xf32> to vector<1x288xf32>
    %c0_115 = arith.constant 0 : index
    %c8 = arith.constant 8 : index
    %c0_116 = arith.constant 0 : index
    %126 = vector.load %arg6[%c0_115, %c8, %c0_116] : memref<1x36x288xf32, #tpu.memory_space<vmem>>, vector<1x1x288xf32>
    %127 = vector.shape_cast %126 : vector<1x1x288xf32> to vector<1x288xf32>
    %128 = vector.shape_cast %125 : vector<1x288xf32> to vector<1x1x288xf32>
    tpu.vector_store %arg6[%c0_115, %c8, %c0_116], %128 {strides = array<i32>} : memref<1x36x288xf32, #tpu.memory_space<vmem>>, vector<1x1x288xf32>,
    %c0_117 = arith.constant 0 : index
    %c1_118 = arith.constant 1 : index
    %c2_119 = arith.constant 2 : index
    %129 = vector.load %arg5[%c0_117, %c1_118, %c2_119] : memref<1x4x342xf32, #tpu.memory_space<vmem>>, vector<1x1x288xf32>
    %130 = vector.shape_cast %129 : vector<1x1x288xf32> to vector<1x288xf32>
    %c0_120 = arith.constant 0 : index
    %c9 = arith.constant 9 : index
    %c0_121 = arith.constant 0 : index
    %131 = vector.load %arg6[%c0_120, %c9, %c0_121] : memref<1x36x288xf32, #tpu.memory_space<vmem>>, vector<1x1x288xf32>
    %132 = vector.shape_cast %131 : vector<1x1x288xf32> to vector<1x288xf32>
    %133 = vector.shape_cast %130 : vector<1x288xf32> to vector<1x1x288xf32>
    tpu.vector_store %arg6[%c0_120, %c9, %c0_121], %133 {strides = array<i32>} : memref<1x36x288xf32, #tpu.memory_space<vmem>>, vector<1x1x288xf32>,
    %c0_122 = arith.constant 0 : index
    %c2_123 = arith.constant 2 : index
    %c2_124 = arith.constant 2 : index
    %134 = vector.load %arg5[%c0_122, %c2_123, %c2_124] : memref<1x4x342xf32, #tpu.memory_space<vmem>>, vector<1x1x288xf32>
    %135 = vector.shape_cast %134 : vector<1x1x288xf32> to vector<1x288xf32>
    %c0_125 = arith.constant 0 : index
    %c10 = arith.constant 10 : index
    %c0_126 = arith.constant 0 : index
    %136 = vector.load %arg6[%c0_125, %c10, %c0_126] : memref<1x36x288xf32, #tpu.memory_space<vmem>>, vector<1x1x288xf32>
    %137 = vector.shape_cast %136 : vector<1x1x288xf32> to vector<1x288xf32>
    %138 = vector.shape_cast %135 : vector<1x288xf32> to vector<1x1x288xf32>
    tpu.vector_store %arg6[%c0_125, %c10, %c0_126], %138 {strides = array<i32>} : memref<1x36x288xf32, #tpu.memory_space<vmem>>, vector<1x1x288xf32>,
    %c0_127 = arith.constant 0 : index
    %c3_128 = arith.constant 3 : index
    %c2_129 = arith.constant 2 : index
    %139 = vector.load %arg5[%c0_127, %c3_128, %c2_129] : memref<1x4x342xf32, #tpu.memory_space<vmem>>, vector<1x1x288xf32>
    %140 = vector.shape_cast %139 : vector<1x1x288xf32> to vector<1x288xf32>
    %c0_130 = arith.constant 0 : index
    %c11 = arith.constant 11 : index
    %c0_131 = arith.constant 0 : index
    %141 = vector.load %arg6[%c0_130, %c11, %c0_131] : memref<1x36x288xf32, #tpu.memory_space<vmem>>, vector<1x1x288xf32>
    %142 = vector.shape_cast %141 : vector<1x1x288xf32> to vector<1x288xf32>
    %143 = vector.shape_cast %140 : vector<1x288xf32> to vector<1x1x288xf32>
    tpu.vector_store %arg6[%c0_130, %c11, %c0_131], %143 {strides = array<i32>} : memref<1x36x288xf32, #tpu.memory_space<vmem>>, vector<1x1x288xf32>,
    %c0_132 = arith.constant 0 : index
    %c0_133 = arith.constant 0 : index
    %c18 = arith.constant 18 : index
    %144 = vector.load %arg5[%c0_132, %c0_133, %c18] : memref<1x4x342xf32, #tpu.memory_space<vmem>>, vector<1x1x288xf32>
    %145 = vector.shape_cast %144 : vector<1x1x288xf32> to vector<1x288xf32>
    %c0_134 = arith.constant 0 : index
    %c12 = arith.constant 12 : index
    %c0_135 = arith.constant 0 : index
    %146 = vector.load %arg6[%c0_134, %c12, %c0_135] : memref<1x36x288xf32, #tpu.memory_space<vmem>>, vector<1x1x288xf32>
    %147 = vector.shape_cast %146 : vector<1x1x288xf32> to vector<1x288xf32>
    %148 = vector.shape_cast %145 : vector<1x288xf32> to vector<1x1x288xf32>
    tpu.vector_store %arg6[%c0_134, %c12, %c0_135], %148 {strides = array<i32>} : memref<1x36x288xf32, #tpu.memory_space<vmem>>, vector<1x1x288xf32>,
    %c0_136 = arith.constant 0 : index
    %c1_137 = arith.constant 1 : index
    %c18_138 = arith.constant 18 : index
    %149 = vector.load %arg5[%c0_136, %c1_137, %c18_138] : memref<1x4x342xf32, #tpu.memory_space<vmem>>, vector<1x1x288xf32>
    %150 = vector.shape_cast %149 : vector<1x1x288xf32> to vector<1x288xf32>
    %c0_139 = arith.constant 0 : index
    %c13 = arith.constant 13 : index
    %c0_140 = arith.constant 0 : index
    %151 = vector.load %arg6[%c0_139, %c13, %c0_140] : memref<1x36x288xf32, #tpu.memory_space<vmem>>, vector<1x1x288xf32>
    %152 = vector.shape_cast %151 : vector<1x1x288xf32> to vector<1x288xf32>
    %153 = vector.shape_cast %150 : vector<1x288xf32> to vector<1x1x288xf32>
    tpu.vector_store %arg6[%c0_139, %c13, %c0_140], %153 {strides = array<i32>} : memref<1x36x288xf32, #tpu.memory_space<vmem>>, vector<1x1x288xf32>,
    %c0_141 = arith.constant 0 : index
    %c2_142 = arith.constant 2 : index
    %c18_143 = arith.constant 18 : index
    %154 = vector.load %arg5[%c0_141, %c2_142, %c18_143] : memref<1x4x342xf32, #tpu.memory_space<vmem>>, vector<1x1x288xf32>
    %155 = vector.shape_cast %154 : vector<1x1x288xf32> to vector<1x288xf32>
    %c0_144 = arith.constant 0 : index
    %c14 = arith.constant 14 : index
    %c0_145 = arith.constant 0 : index
    %156 = vector.load %arg6[%c0_144, %c14, %c0_145] : memref<1x36x288xf32, #tpu.memory_space<vmem>>, vector<1x1x288xf32>
    %157 = vector.shape_cast %156 : vector<1x1x288xf32> to vector<1x288xf32>
    %158 = vector.shape_cast %155 : vector<1x288xf32> to vector<1x1x288xf32>
    tpu.vector_store %arg6[%c0_144, %c14, %c0_145], %158 {strides = array<i32>} : memref<1x36x288xf32, #tpu.memory_space<vmem>>, vector<1x1x288xf32>,
    %c0_146 = arith.constant 0 : index
    %c3_147 = arith.constant 3 : index
    %c18_148 = arith.constant 18 : index
    %159 = vector.load %arg5[%c0_146, %c3_147, %c18_148] : memref<1x4x342xf32, #tpu.memory_space<vmem>>, vector<1x1x288xf32>
    %160 = vector.shape_cast %159 : vector<1x1x288xf32> to vector<1x288xf32>
    %c0_149 = arith.constant 0 : index
    %c15 = arith.constant 15 : index
    %c0_150 = arith.constant 0 : index
    %161 = vector.load %arg6[%c0_149, %c15, %c0_150] : memref<1x36x288xf32, #tpu.memory_space<vmem>>, vector<1x1x288xf32>
    %162 = vector.shape_cast %161 : vector<1x1x288xf32> to vector<1x288xf32>
    %163 = vector.shape_cast %160 : vector<1x288xf32> to vector<1x1x288xf32>
    tpu.vector_store %arg6[%c0_149, %c15, %c0_150], %163 {strides = array<i32>} : memref<1x36x288xf32, #tpu.memory_space<vmem>>, vector<1x1x288xf32>,
    %c0_151 = arith.constant 0 : index
    %c0_152 = arith.constant 0 : index
    %c19_153 = arith.constant 19 : index
    %164 = vector.load %arg5[%c0_151, %c0_152, %c19_153] : memref<1x4x342xf32, #tpu.memory_space<vmem>>, vector<1x1x288xf32>
    %165 = vector.shape_cast %164 : vector<1x1x288xf32> to vector<1x288xf32>
    %c0_154 = arith.constant 0 : index
    %c16_155 = arith.constant 16 : index
    %c0_156 = arith.constant 0 : index
    %166 = vector.load %arg6[%c0_154, %c16_155, %c0_156] : memref<1x36x288xf32, #tpu.memory_space<vmem>>, vector<1x1x288xf32>
    %167 = vector.shape_cast %166 : vector<1x1x288xf32> to vector<1x288xf32>
    %168 = vector.shape_cast %165 : vector<1x288xf32> to vector<1x1x288xf32>
    tpu.vector_store %arg6[%c0_154, %c16_155, %c0_156], %168 {strides = array<i32>} : memref<1x36x288xf32, #tpu.memory_space<vmem>>, vector<1x1x288xf32>,
    %c0_157 = arith.constant 0 : index
    %c1_158 = arith.constant 1 : index
    %c19_159 = arith.constant 19 : index
    %169 = vector.load %arg5[%c0_157, %c1_158, %c19_159] : memref<1x4x342xf32, #tpu.memory_space<vmem>>, vector<1x1x288xf32>
    %170 = vector.shape_cast %169 : vector<1x1x288xf32> to vector<1x288xf32>
    %c0_160 = arith.constant 0 : index
    %c17 = arith.constant 17 : index
    %c0_161 = arith.constant 0 : index
    %171 = vector.load %arg6[%c0_160, %c17, %c0_161] : memref<1x36x288xf32, #tpu.memory_space<vmem>>, vector<1x1x288xf32>
    %172 = vector.shape_cast %171 : vector<1x1x288xf32> to vector<1x288xf32>
    %173 = vector.shape_cast %170 : vector<1x288xf32> to vector<1x1x288xf32>
    tpu.vector_store %arg6[%c0_160, %c17, %c0_161], %173 {strides = array<i32>} : memref<1x36x288xf32, #tpu.memory_space<vmem>>, vector<1x1x288xf32>,
    %c0_162 = arith.constant 0 : index
    %c2_163 = arith.constant 2 : index
    %c19_164 = arith.constant 19 : index
    %174 = vector.load %arg5[%c0_162, %c2_163, %c19_164] : memref<1x4x342xf32, #tpu.memory_space<vmem>>, vector<1x1x288xf32>
    %175 = vector.shape_cast %174 : vector<1x1x288xf32> to vector<1x288xf32>
    %c0_165 = arith.constant 0 : index
    %c18_166 = arith.constant 18 : index
    %c0_167 = arith.constant 0 : index
    %176 = vector.load %arg6[%c0_165, %c18_166, %c0_167] : memref<1x36x288xf32, #tpu.memory_space<vmem>>, vector<1x1x288xf32>
    %177 = vector.shape_cast %176 : vector<1x1x288xf32> to vector<1x288xf32>
    %178 = vector.shape_cast %175 : vector<1x288xf32> to vector<1x1x288xf32>
    tpu.vector_store %arg6[%c0_165, %c18_166, %c0_167], %178 {strides = array<i32>} : memref<1x36x288xf32, #tpu.memory_space<vmem>>, vector<1x1x288xf32>,
    %c0_168 = arith.constant 0 : index
    %c3_169 = arith.constant 3 : index
    %c19_170 = arith.constant 19 : index
    %179 = vector.load %arg5[%c0_168, %c3_169, %c19_170] : memref<1x4x342xf32, #tpu.memory_space<vmem>>, vector<1x1x288xf32>
    %180 = vector.shape_cast %179 : vector<1x1x288xf32> to vector<1x288xf32>
    %c0_171 = arith.constant 0 : index
    %c19_172 = arith.constant 19 : index
    %c0_173 = arith.constant 0 : index
    %181 = vector.load %arg6[%c0_171, %c19_172, %c0_173] : memref<1x36x288xf32, #tpu.memory_space<vmem>>, vector<1x1x288xf32>
    %182 = vector.shape_cast %181 : vector<1x1x288xf32> to vector<1x288xf32>
    %183 = vector.shape_cast %180 : vector<1x288xf32> to vector<1x1x288xf32>
    tpu.vector_store %arg6[%c0_171, %c19_172, %c0_173], %183 {strides = array<i32>} : memref<1x36x288xf32, #tpu.memory_space<vmem>>, vector<1x1x288xf32>,
    %c0_174 = arith.constant 0 : index
    %c0_175 = arith.constant 0 : index
    %c20 = arith.constant 20 : index
    %184 = vector.load %arg5[%c0_174, %c0_175, %c20] : memref<1x4x342xf32, #tpu.memory_space<vmem>>, vector<1x1x288xf32>
    %185 = vector.shape_cast %184 : vector<1x1x288xf32> to vector<1x288xf32>
    %c0_176 = arith.constant 0 : index
    %c20_177 = arith.constant 20 : index
    %c0_178 = arith.constant 0 : index
    %186 = vector.load %arg6[%c0_176, %c20_177, %c0_178] : memref<1x36x288xf32, #tpu.memory_space<vmem>>, vector<1x1x288xf32>
    %187 = vector.shape_cast %186 : vector<1x1x288xf32> to vector<1x288xf32>
    %188 = vector.shape_cast %185 : vector<1x288xf32> to vector<1x1x288xf32>
    tpu.vector_store %arg6[%c0_176, %c20_177, %c0_178], %188 {strides = array<i32>} : memref<1x36x288xf32, #tpu.memory_space<vmem>>, vector<1x1x288xf32>,
    %c0_179 = arith.constant 0 : index
    %c1_180 = arith.constant 1 : index
    %c20_181 = arith.constant 20 : index
    %189 = vector.load %arg5[%c0_179, %c1_180, %c20_181] : memref<1x4x342xf32, #tpu.memory_space<vmem>>, vector<1x1x288xf32>
    %190 = vector.shape_cast %189 : vector<1x1x288xf32> to vector<1x288xf32>
    %c0_182 = arith.constant 0 : index
    %c21 = arith.constant 21 : index
    %c0_183 = arith.constant 0 : index
    %191 = vector.load %arg6[%c0_182, %c21, %c0_183] : memref<1x36x288xf32, #tpu.memory_space<vmem>>, vector<1x1x288xf32>
    %192 = vector.shape_cast %191 : vector<1x1x288xf32> to vector<1x288xf32>
    %193 = vector.shape_cast %190 : vector<1x288xf32> to vector<1x1x288xf32>
    tpu.vector_store %arg6[%c0_182, %c21, %c0_183], %193 {strides = array<i32>} : memref<1x36x288xf32, #tpu.memory_space<vmem>>, vector<1x1x288xf32>,
    %c0_184 = arith.constant 0 : index
    %c2_185 = arith.constant 2 : index
    %c20_186 = arith.constant 20 : index
    %194 = vector.load %arg5[%c0_184, %c2_185, %c20_186] : memref<1x4x342xf32, #tpu.memory_space<vmem>>, vector<1x1x288xf32>
    %195 = vector.shape_cast %194 : vector<1x1x288xf32> to vector<1x288xf32>
    %c0_187 = arith.constant 0 : index
    %c22 = arith.constant 22 : index
    %c0_188 = arith.constant 0 : index
    %196 = vector.load %arg6[%c0_187, %c22, %c0_188] : memref<1x36x288xf32, #tpu.memory_space<vmem>>, vector<1x1x288xf32>
    %197 = vector.shape_cast %196 : vector<1x1x288xf32> to vector<1x288xf32>
    %198 = vector.shape_cast %195 : vector<1x288xf32> to vector<1x1x288xf32>
    tpu.vector_store %arg6[%c0_187, %c22, %c0_188], %198 {strides = array<i32>} : memref<1x36x288xf32, #tpu.memory_space<vmem>>, vector<1x1x288xf32>,
    %c0_189 = arith.constant 0 : index
    %c3_190 = arith.constant 3 : index
    %c20_191 = arith.constant 20 : index
    %199 = vector.load %arg5[%c0_189, %c3_190, %c20_191] : memref<1x4x342xf32, #tpu.memory_space<vmem>>, vector<1x1x288xf32>
    %200 = vector.shape_cast %199 : vector<1x1x288xf32> to vector<1x288xf32>
    %c0_192 = arith.constant 0 : index
    %c23 = arith.constant 23 : index
    %c0_193 = arith.constant 0 : index
    %201 = vector.load %arg6[%c0_192, %c23, %c0_193] : memref<1x36x288xf32, #tpu.memory_space<vmem>>, vector<1x1x288xf32>
    %202 = vector.shape_cast %201 : vector<1x1x288xf32> to vector<1x288xf32>
    %203 = vector.shape_cast %200 : vector<1x288xf32> to vector<1x1x288xf32>
    tpu.vector_store %arg6[%c0_192, %c23, %c0_193], %203 {strides = array<i32>} : memref<1x36x288xf32, #tpu.memory_space<vmem>>, vector<1x1x288xf32>,
    %c0_194 = arith.constant 0 : index
    %c0_195 = arith.constant 0 : index
    %c36 = arith.constant 36 : index
    %204 = vector.load %arg5[%c0_194, %c0_195, %c36] : memref<1x4x342xf32, #tpu.memory_space<vmem>>, vector<1x1x288xf32>
    %205 = vector.shape_cast %204 : vector<1x1x288xf32> to vector<1x288xf32>
    %c0_196 = arith.constant 0 : index
    %c24 = arith.constant 24 : index
    %c0_197 = arith.constant 0 : index
    %206 = vector.load %arg6[%c0_196, %c24, %c0_197] : memref<1x36x288xf32, #tpu.memory_space<vmem>>, vector<1x1x288xf32>
    %207 = vector.shape_cast %206 : vector<1x1x288xf32> to vector<1x288xf32>
    %208 = vector.shape_cast %205 : vector<1x288xf32> to vector<1x1x288xf32>
    tpu.vector_store %arg6[%c0_196, %c24, %c0_197], %208 {strides = array<i32>} : memref<1x36x288xf32, #tpu.memory_space<vmem>>, vector<1x1x288xf32>,
    %c0_198 = arith.constant 0 : index
    %c1_199 = arith.constant 1 : index
    %c36_200 = arith.constant 36 : index
    %209 = vector.load %arg5[%c0_198, %c1_199, %c36_200] : memref<1x4x342xf32, #tpu.memory_space<vmem>>, vector<1x1x288xf32>
    %210 = vector.shape_cast %209 : vector<1x1x288xf32> to vector<1x288xf32>
    %c0_201 = arith.constant 0 : index
    %c25 = arith.constant 25 : index
    %c0_202 = arith.constant 0 : index
    %211 = vector.load %arg6[%c0_201, %c25, %c0_202] : memref<1x36x288xf32, #tpu.memory_space<vmem>>, vector<1x1x288xf32>
    %212 = vector.shape_cast %211 : vector<1x1x288xf32> to vector<1x288xf32>
    %213 = vector.shape_cast %210 : vector<1x288xf32> to vector<1x1x288xf32>
    tpu.vector_store %arg6[%c0_201, %c25, %c0_202], %213 {strides = array<i32>} : memref<1x36x288xf32, #tpu.memory_space<vmem>>, vector<1x1x288xf32>,
    %c0_203 = arith.constant 0 : index
    %c2_204 = arith.constant 2 : index
    %c36_205 = arith.constant 36 : index
    %214 = vector.load %arg5[%c0_203, %c2_204, %c36_205] : memref<1x4x342xf32, #tpu.memory_space<vmem>>, vector<1x1x288xf32>
    %215 = vector.shape_cast %214 : vector<1x1x288xf32> to vector<1x288xf32>
    %c0_206 = arith.constant 0 : index
    %c26 = arith.constant 26 : index
    %c0_207 = arith.constant 0 : index
    %216 = vector.load %arg6[%c0_206, %c26, %c0_207] : memref<1x36x288xf32, #tpu.memory_space<vmem>>, vector<1x1x288xf32>
    %217 = vector.shape_cast %216 : vector<1x1x288xf32> to vector<1x288xf32>
    %218 = vector.shape_cast %215 : vector<1x288xf32> to vector<1x1x288xf32>
    tpu.vector_store %arg6[%c0_206, %c26, %c0_207], %218 {strides = array<i32>} : memref<1x36x288xf32, #tpu.memory_space<vmem>>, vector<1x1x288xf32>,
    %c0_208 = arith.constant 0 : index
    %c3_209 = arith.constant 3 : index
    %c36_210 = arith.constant 36 : index
    %219 = vector.load %arg5[%c0_208, %c3_209, %c36_210] : memref<1x4x342xf32, #tpu.memory_space<vmem>>, vector<1x1x288xf32>
    %220 = vector.shape_cast %219 : vector<1x1x288xf32> to vector<1x288xf32>
    %c0_211 = arith.constant 0 : index
    %c27 = arith.constant 27 : index
    %c0_212 = arith.constant 0 : index
    %221 = vector.load %arg6[%c0_211, %c27, %c0_212] : memref<1x36x288xf32, #tpu.memory_space<vmem>>, vector<1x1x288xf32>
    %222 = vector.shape_cast %221 : vector<1x1x288xf32> to vector<1x288xf32>
    %223 = vector.shape_cast %220 : vector<1x288xf32> to vector<1x1x288xf32>
    tpu.vector_store %arg6[%c0_211, %c27, %c0_212], %223 {strides = array<i32>} : memref<1x36x288xf32, #tpu.memory_space<vmem>>, vector<1x1x288xf32>,
    %c0_213 = arith.constant 0 : index
    %c0_214 = arith.constant 0 : index
    %c37_215 = arith.constant 37 : index
    %224 = vector.load %arg5[%c0_213, %c0_214, %c37_215] : memref<1x4x342xf32, #tpu.memory_space<vmem>>, vector<1x1x288xf32>
    %225 = vector.shape_cast %224 : vector<1x1x288xf32> to vector<1x288xf32>
    %c0_216 = arith.constant 0 : index
    %c28 = arith.constant 28 : index
    %c0_217 = arith.constant 0 : index
    %226 = vector.load %arg6[%c0_216, %c28, %c0_217] : memref<1x36x288xf32, #tpu.memory_space<vmem>>, vector<1x1x288xf32>
    %227 = vector.shape_cast %226 : vector<1x1x288xf32> to vector<1x288xf32>
    %228 = vector.shape_cast %225 : vector<1x288xf32> to vector<1x1x288xf32>
    tpu.vector_store %arg6[%c0_216, %c28, %c0_217], %228 {strides = array<i32>} : memref<1x36x288xf32, #tpu.memory_space<vmem>>, vector<1x1x288xf32>,
    %c0_218 = arith.constant 0 : index
    %c1_219 = arith.constant 1 : index
    %c37_220 = arith.constant 37 : index
    %229 = vector.load %arg5[%c0_218, %c1_219, %c37_220] : memref<1x4x342xf32, #tpu.memory_space<vmem>>, vector<1x1x288xf32>
    %230 = vector.shape_cast %229 : vector<1x1x288xf32> to vector<1x288xf32>
    %c0_221 = arith.constant 0 : index
    %c29 = arith.constant 29 : index
    %c0_222 = arith.constant 0 : index
    %231 = vector.load %arg6[%c0_221, %c29, %c0_222] : memref<1x36x288xf32, #tpu.memory_space<vmem>>, vector<1x1x288xf32>
    %232 = vector.shape_cast %231 : vector<1x1x288xf32> to vector<1x288xf32>
    %233 = vector.shape_cast %230 : vector<1x288xf32> to vector<1x1x288xf32>
    tpu.vector_store %arg6[%c0_221, %c29, %c0_222], %233 {strides = array<i32>} : memref<1x36x288xf32, #tpu.memory_space<vmem>>, vector<1x1x288xf32>,
    %c0_223 = arith.constant 0 : index
    %c2_224 = arith.constant 2 : index
    %c37_225 = arith.constant 37 : index
    %234 = vector.load %arg5[%c0_223, %c2_224, %c37_225] : memref<1x4x342xf32, #tpu.memory_space<vmem>>, vector<1x1x288xf32>
    %235 = vector.shape_cast %234 : vector<1x1x288xf32> to vector<1x288xf32>
    %c0_226 = arith.constant 0 : index
    %c30 = arith.constant 30 : index
    %c0_227 = arith.constant 0 : index
    %236 = vector.load %arg6[%c0_226, %c30, %c0_227] : memref<1x36x288xf32, #tpu.memory_space<vmem>>, vector<1x1x288xf32>
    %237 = vector.shape_cast %236 : vector<1x1x288xf32> to vector<1x288xf32>
    %238 = vector.shape_cast %235 : vector<1x288xf32> to vector<1x1x288xf32>
    tpu.vector_store %arg6[%c0_226, %c30, %c0_227], %238 {strides = array<i32>} : memref<1x36x288xf32, #tpu.memory_space<vmem>>, vector<1x1x288xf32>,
    %c0_228 = arith.constant 0 : index
    %c3_229 = arith.constant 3 : index
    %c37_230 = arith.constant 37 : index
    %239 = vector.load %arg5[%c0_228, %c3_229, %c37_230] : memref<1x4x342xf32, #tpu.memory_space<vmem>>, vector<1x1x288xf32>
    %240 = vector.shape_cast %239 : vector<1x1x288xf32> to vector<1x288xf32>
    %c0_231 = arith.constant 0 : index
    %c31 = arith.constant 31 : index
    %c0_232 = arith.constant 0 : index
    %241 = vector.load %arg6[%c0_231, %c31, %c0_232] : memref<1x36x288xf32, #tpu.memory_space<vmem>>, vector<1x1x288xf32>
    %242 = vector.shape_cast %241 : vector<1x1x288xf32> to vector<1x288xf32>
    %243 = vector.shape_cast %240 : vector<1x288xf32> to vector<1x1x288xf32>
    tpu.vector_store %arg6[%c0_231, %c31, %c0_232], %243 {strides = array<i32>} : memref<1x36x288xf32, #tpu.memory_space<vmem>>, vector<1x1x288xf32>,
    %c0_233 = arith.constant 0 : index
    %c0_234 = arith.constant 0 : index
    %c38 = arith.constant 38 : index
    %244 = vector.load %arg5[%c0_233, %c0_234, %c38] : memref<1x4x342xf32, #tpu.memory_space<vmem>>, vector<1x1x288xf32>
    %245 = vector.shape_cast %244 : vector<1x1x288xf32> to vector<1x288xf32>
    %c0_235 = arith.constant 0 : index
    %c32_236 = arith.constant 32 : index
    %c0_237 = arith.constant 0 : index
    %246 = vector.load %arg6[%c0_235, %c32_236, %c0_237] : memref<1x36x288xf32, #tpu.memory_space<vmem>>, vector<1x1x288xf32>
    %247 = vector.shape_cast %246 : vector<1x1x288xf32> to vector<1x288xf32>
    %248 = vector.shape_cast %245 : vector<1x288xf32> to vector<1x1x288xf32>
    tpu.vector_store %arg6[%c0_235, %c32_236, %c0_237], %248 {strides = array<i32>} : memref<1x36x288xf32, #tpu.memory_space<vmem>>, vector<1x1x288xf32>,
    %c0_238 = arith.constant 0 : index
    %c1_239 = arith.constant 1 : index
    %c38_240 = arith.constant 38 : index
    %249 = vector.load %arg5[%c0_238, %c1_239, %c38_240] : memref<1x4x342xf32, #tpu.memory_space<vmem>>, vector<1x1x288xf32>
    %250 = vector.shape_cast %249 : vector<1x1x288xf32> to vector<1x288xf32>
    %c0_241 = arith.constant 0 : index
    %c33 = arith.constant 33 : index
    %c0_242 = arith.constant 0 : index
    %251 = vector.load %arg6[%c0_241, %c33, %c0_242] : memref<1x36x288xf32, #tpu.memory_space<vmem>>, vector<1x1x288xf32>
    %252 = vector.shape_cast %251 : vector<1x1x288xf32> to vector<1x288xf32>
    %253 = vector.shape_cast %250 : vector<1x288xf32> to vector<1x1x288xf32>
    tpu.vector_store %arg6[%c0_241, %c33, %c0_242], %253 {strides = array<i32>} : memref<1x36x288xf32, #tpu.memory_space<vmem>>, vector<1x1x288xf32>,
    %c0_243 = arith.constant 0 : index
    %c2_244 = arith.constant 2 : index
    %c38_245 = arith.constant 38 : index
    %254 = vector.load %arg5[%c0_243, %c2_244, %c38_245] : memref<1x4x342xf32, #tpu.memory_space<vmem>>, vector<1x1x288xf32>
    %255 = vector.shape_cast %254 : vector<1x1x288xf32> to vector<1x288xf32>
    %c0_246 = arith.constant 0 : index
    %c34 = arith.constant 34 : index
    %c0_247 = arith.constant 0 : index
    %256 = vector.load %arg6[%c0_246, %c34, %c0_247] : memref<1x36x288xf32, #tpu.memory_space<vmem>>, vector<1x1x288xf32>
    %257 = vector.shape_cast %256 : vector<1x1x288xf32> to vector<1x288xf32>
    %258 = vector.shape_cast %255 : vector<1x288xf32> to vector<1x1x288xf32>
    tpu.vector_store %arg6[%c0_246, %c34, %c0_247], %258 {strides = array<i32>} : memref<1x36x288xf32, #tpu.memory_space<vmem>>, vector<1x1x288xf32>,
    %c0_248 = arith.constant 0 : index
    %c3_249 = arith.constant 3 : index
    %c38_250 = arith.constant 38 : index
    %259 = vector.load %arg5[%c0_248, %c3_249, %c38_250] : memref<1x4x342xf32, #tpu.memory_space<vmem>>, vector<1x1x288xf32>
    %260 = vector.shape_cast %259 : vector<1x1x288xf32> to vector<1x288xf32>
    %c0_251 = arith.constant 0 : index
    %c35 = arith.constant 35 : index
    %c0_252 = arith.constant 0 : index
    %261 = vector.load %arg6[%c0_251, %c35, %c0_252] : memref<1x36x288xf32, #tpu.memory_space<vmem>>, vector<1x1x288xf32>
    %262 = vector.shape_cast %261 : vector<1x1x288xf32> to vector<1x288xf32>
    %263 = vector.shape_cast %260 : vector<1x288xf32> to vector<1x1x288xf32>
    tpu.vector_store %arg6[%c0_251, %c35, %c0_252], %263 {strides = array<i32>} : memref<1x36x288xf32, #tpu.memory_space<vmem>>, vector<1x1x288xf32>,
    %c0_253 = arith.constant 0 : index
    %c0_254 = arith.constant 0 : index
    %c0_255 = arith.constant 0 : index
    %264 = vector.load %arg6[%c0_253, %c0_254, %c0_255] : memref<1x36x288xf32, #tpu.memory_space<vmem>>, vector<1x36x288xf32>
    %265 = vector.shape_cast %264 : vector<1x36x288xf32> to vector<36x288xf32>
    %cst_256 = arith.constant dense<0.000000e+00> : vector<8x288xf32>
    %266 = tpu.matmul %0, %265, %cst_256 {dimension_numbers = #tpu.dot_dimension_numbers<[1], [0], [0], [1], [0, 0, 1, 1], [], []>} : vector<8x36xf32>, vector<36x288xf32>, vector<8x288xf32> -> vector<8x288xf32>
    %267 = vector.broadcast %1 : vector<8x1xf32> to vector<8x288xf32>
    %268 = arith.addf %266, %267 : vector<8x288xf32>
    %c0_257 = arith.constant 0 : index
    %c0_258 = arith.constant 0 : index
    %c0_259 = arith.constant 0 : index
    %269 = vector.load %arg4[%c0_257, %c0_258, %c0_259] : memref<1x8x288xf32, #tpu.memory_space<vmem>>, vector<1x8x288xf32>
    %270 = vector.shape_cast %269 : vector<1x8x288xf32> to vector<8x288xf32>
    %271 = vector.shape_cast %268 : vector<8x288xf32> to vector<1x8x288xf32>
    tpu.vector_store %arg4[%c0_257, %c0_258, %c0_259], %271 {strides = array<i32>} : memref<1x8x288xf32, #tpu.memory_space<vmem>>, vector<1x8x288xf32>,
    return
  }
  func.func @transform_0(%arg0: i32) -> (i32, i32, i32) {
    %c0_i32 = arith.constant 0 : i32
    %c0_i32_0 = arith.constant 0 : i32
    %c0_i32_1 = arith.constant 0 : i32
    return %arg0, %c0_i32, %c0_i32_0 : i32, i32, i32
  }
  func.func @transform_1(%arg0: i32) -> (i32, i32) {
    %c0_i32 = arith.constant 0 : i32
    %c0_i32_0 = arith.constant 0 : i32
    %c0_i32_1 = arith.constant 0 : i32
    return %c0_i32, %c0_i32_0 : i32, i32
  }
  func.func @transform_2(%arg0: i32) -> (i32, i32) {
    %c0_i32 = arith.constant 0 : i32
    %c0_i32_0 = arith.constant 0 : i32
    %c0_i32_1 = arith.constant 0 : i32
    return %c0_i32, %c0_i32_0 : i32, i32
  }
  func.func @transform_3(%arg0: i32) -> (i32, i32, i32) {
    %c0_i32 = arith.constant 0 : i32
    %c0_i32_0 = arith.constant 0 : i32
    %c0_i32_1 = arith.constant 0 : i32
    return %arg0, %c0_i32, %c0_i32_0 : i32, i32, i32
  }
}

</mosaic_0001>

<bundles_post_ra>
// kernel: pallas_conv2d_s1.1
= control target key start
LH: loop header
LB: loop body
LE: loop exit
PB: predicated region body
PF: predicated region fallthrough
CT: control target
= control target key end

     0   :  { %s1009_s12 = smov 0   ;;  %s1151_s0 = inlined_call_operand.vmem [shape: f32[2,4,256], index: 0, kind: input, shape index: {}]   ;;  %s1152_s1 = inlined_call_operand.vmem [shape: f32[8,36], index: 1, kind: input, shape index: {}]   ;;  %s1153_s2 = inlined_call_operand.vmem [shape: f32[8,1], index: 2, kind: input, shape index: {}]   ;;  %s1154_s3 = inlined_call_operand.vmem [shape: f32[2,8,288], index: 3, kind: output, shape index: {}]  }
   0x1 LB: > { %s882_s13 = sadd.s32 4294967295, %s960_s12   ;;  %p886_p0 = scmp.ge.s32.totalorder %s960_s12, 1  ;;  %s960_s12 = sphi %s1009_s12, %s13_s12  }
   0x2   : > { %p137_p1 = scmp.lt.s32.totalorder %s960_s12, 3 }
   0x4   : > { %p138_p2 = pnand %p886_p0, %p137_p1 }
   0x5   : > { %p161_p3 = scmp.lt.s32.totalorder (!%p138_p2), %s882_s13, 1  ;;  %s963_s18 = smov (!%p138_p2), 23  }
   0x6   : > { %141 = sbr.rel (%p138_p2) target bundleno = 554 (0x22a), region = 32  ;;  %s964_s19 = smov (!%p138_p2), 19  }
   0x7   : > { %s965_s20 = smov (!%p138_p2), 25   ;;  %s966_s21 = smov (!%p138_p2), 21  }
   0x8   : > { %s967_s22 = smov (!%p138_p2), 27   ;;  %s968_s23 = smov (!%p138_p2), 31  }
   0x9   : > { %s969_s24 = smov (!%p138_p2), 33   ;;  %s970_s25 = smov (!%p138_p2), 29  }
   0xa   : > { %s971_s26 = smov (!%p138_p2), 37   ;;  %s972_s27 = smov (!%p138_p2), 35  }
   0xb   : > { %v962_v0 = vmov 0.0   ;;  %s1158_s13 = smov (!%p161_p3, %s882_s13), 1  ;;  %vm174_vm0 = vcmask 699392   ;;  %s973_s28 = smov 45   ;;  %vm181_vm1 = vcmask 281752   ;;  %vm188_vm2 = vcmask 429352  }
   0xc   : > { %173 = vst [vmem:[#allocation2] sm:$0xff] %v962_v0  ;;  %904 = vmatprep.subr.mxu1 %v962_v0  ;;  %746 = vmatprep.mubr.f32.mxu0 %v962_v0  ;;  %s897_s14 = sshll.u32 %s1158_s13, 3  ;;  %175 = vst.msk [vmem:[#allocation2 + $0x8] sm:$0xf] %vm174_vm0, %v962_v0  ;;  %s974_s29 = smov 39   ;;  %vm195_vm3 = vcmask 576952   ;;  %v299_v43 = vlaneseq }
   0xd   : > { %s1026_s17 = scalar_lea.vmem %s1151_s0, %s897_s14  ;;  %s975_s30 = smov 41   ;;  %vm202_vm4 = vcmask 724552   ;;  %vm209_vm5 = vcmask 872152   ;;  %vm226_vm6 = vcmask 1044472   ;;  %vm227_vm7 = vcmask 121860  }
   0xe   : > { %v190_v1 = vld [vmem:[%s1026_s17] sm:$0xf]  ;;  %v244_v9 = vld [vmem:[%s1026_s17 + $0x4] sm:$0xf]  ;;  %s976_s4 = smov 43   ;;  %s977_s5 = smov 47   ;;  %vm228_vm10 = vmor %vm227_vm7, %vm226_vm6 }
   0xf   : > { %v176_v2 = vld [vmem:[%s1026_s17] sm:$0xf]  ;;  %192 = vrot.lane.b32.xlu1 %v190_v1, %s963_s18  ;;  %v237_v10 = vld [vmem:[%s1026_s17 + $0x4] sm:$0xf]  ;;  %s978_s6 = smov 49   ;;  %vm223_vm8 = vcmask 252928  }
  0x10   : > { %178 = vrot.lane.b32.xlu0 %v176_v2, %s964_s19  ;;  %v197_v3 = vld [vmem:[%s1026_s17] sm:$0xf]  ;;  %v272_v11 = vld [vmem:[%s1026_s17 + $0x4] sm:$0xf]  ;;  %vm216_vm9 = vcmask 1019752   ;;  %vm235_vm11 = vcmask 265352  }
  0x11   : > { %v183_v4 = vld [vmem:[%s1026_s17] sm:$0xf]  ;;  %v251_v12 = vld [vmem:[%s1026_s17 + $0x4] sm:$0xf]  ;;  %vm242_vm12 = vcmask 412952   ;;  %vm249_vm13 = vcmask 560552  }
  0x12   : > { %v204_v5 = vld [vmem:[%s1026_s17] sm:$0xf]  ;;  %v258_v13 = vld [vmem:[%s1026_s17 + $0x4] sm:$0xf]  ;;  %vm256_vm14 = vcmask 708152   ;;  %vm280_vm15 = vcmask 1044456  }
  0x13   : > { %199 = vrot.lane.b32.xlu1 %v197_v3, %s965_s20  ;;  %v218_v6 = vld [vmem:[%s1026_s17] sm:$0xf]  ;;  %v265_v14 = vld [vmem:[%s1026_s17 + $0x4] sm:$0xf]  ;;  %vm281_vm0 = vcmask 105476   ;;  %vm296_vm6 = vcmask 396552  }
  0x14   : > { %185 = vrot.lane.b32.xlu0 %v183_v4, %s966_s21  ;;  %v230_v7 = vld [vmem:[%s1026_s17] sm:$0xf]  ;;  %v284_v15 = vld [vmem:[%s1026_s17 + $0x4] sm:$0xf]  ;;  %s979_s7 = smov 90   ;;  %s980_s8 = smov 92  }
  0x15   : > { %v211_v8 = vld [vmem:[%s1026_s17] sm:$0xf]  ;;  %v291_v16 = vld [vmem:[%s1026_s17 + $0x4] sm:$0xf]  ;;  %vm1045_vm7 = vcmp.lt.s32.totalorder %v299_v43, 288  ;;  %s981_s9 = smov 91  }
  0x16   : > { %s982_s10 = smov 109   ;;  %s983_s11 = smov 108  }
  0x17   : > { %206 = vrot.lane.b32.xlu1 %v204_v5, %s967_s22  ;;  %s984_s14 = smov 126   ;;  %s985_s15 = smov 110  }
  0x18   : > { %220 = vrot.lane.b32.xlu0 %v218_v6, %s968_s23  ;;  %s986_s16 = smov 127   ;;  %s917_s21 = smul.u32 24, %s1158_s13 }
  0x1b   : > { %232 = vrot.lane.b32.xlu1 %v230_v7, %s969_s24  ;;  %s170_s24 = scalar_lea.vmem %s1154_s3, %s917_s21 }
  0x1c   : > { %213 = vrot.lane.b32.xlu0 %v211_v8, %s970_s25 }
  0x1f   : > { %246 = vrot.lane.b32.xlu1 %v244_v9, %s971_s26 }
  0x20   : > { %239 = vrot.lane.b32.xlu0 %v237_v10, %s972_s27 }
  0x23   : > { %274 = vrot.lane.b32.xlu1 %v272_v11, %s973_s28 }
  0x24   : > { %253 = vrot.lane.b32.xlu0 %v251_v12, %s974_s29  ;;  %v988_v12 = vmov 0  }
  0x25   : > { %953 = vset.pattern.permute.xlu0 %v988_v12 }
  0x27   : > { %267 = vrot.lane.b32.xlu1 %v265_v14, %s976_s4 }
  0x28   : > { %260 = vrot.lane.b32.xlu0 %v258_v13, %s975_s30  ;;  %v172_v13 = vld [vmem:[%s1153_s2] sm:$0xff] }
  0x2b   : > { %293 = vrot.lane.b32.xlu1 %v291_v16, %s978_s6 }
  0x2c   : > { %286 = vrot.lane.b32.xlu0 %v284_v15, %s977_s5 }
  0x81   : > { %v193_v17 = vpop.permute.xlu1 %192 }
  0x82   : > { %v179_v18 = vpop.permute.xlu0 %178 }
  0x83   : > { %182 = vst.msk [vmem:[#allocation2] sm:$0xf] %vm181_vm1, %v179_v18  ;;  %vm263_vm1 = vcmask 855752  }
  0x85   : > { %v200_v19 = vpop.permute.xlu1 %199 }
  0x86   : > { %v186_v20 = vpop.permute.xlu0 %185 }
  0x87   : > { %189 = vst.msk [vmem:[#allocation2] sm:$0xf] %vm188_vm2, %v186_v20  ;;  %vm277_vm2 = vcmask 367616  }
  0x88   : > { %196 = vst.msk [vmem:[#allocation2] sm:$0xf] %vm195_vm3, %v193_v17  ;;  %vm270_vm3 = vcmask 1003352  }
  0x89   : > { %203 = vst.msk [vmem:[#allocation2] sm:$0xf] %vm202_vm4, %v200_v19  ;;  %v207_v21 = vpop.permute.xlu1 %206  ;;  %vm282_vm4 = vmor %vm281_vm0, %vm280_vm15  ;;  %vm366_vm15 = vcmask 1031168   ;;  %vm407_vm0 = vcmask 900096  }
  0x8a   : > { %v221_v22 = vpop.permute.xlu0 %220  ;;  %210 = vst.msk [vmem:[#allocation2] sm:$0xf] %vm209_vm5, %v207_v21  ;;  %vm289_vm5 = vcmask 248952  }
  0x8b   : > { %v222_v23 = vrot.slane %v221_v22, 4 }
  0x8d   : > { %v233_v24 = vpop.permute.xlu1 %232  ;;  %v224_v26 = vsel %vm223_vm8, %v222_v23, %v221_v22  ;;  %vm987_vm8 = vmmov 0  }
  0x8e   : > { %v214_v25 = vpop.permute.xlu0 %213  ;;  %914 = vmatprep.mubr.msk.f32.mxu1 %vm987_vm8, %v962_v0 }
  0x8f   : > { %217 = vst.msk [vmem:[#allocation2] sm:$0xf] %vm216_vm9, %v214_v25  ;;  %vm612_vm9 = vcmask 736256  }
  0x90   : > { %229 = vst.msk [vmem:[#allocation2] sm:$0xff] %vm228_vm10, %v224_v26  ;;  %vm530_vm10 = vcmask 752640  }
  0x91   : > { %236 = vst.msk [vmem:[#allocation2 + $0x4] sm:$0xf] %vm235_vm11, %v233_v24  ;;  %v247_v27 = vpop.permute.xlu1 %246  ;;  %vm672_vm11 = vcmask 1043456  }
  0x92   : > { %v240_v28 = vpop.permute.xlu0 %239 }
  0x93   : > { %243 = vst.msk [vmem:[#allocation2 + $0x4] sm:$0xf] %vm242_vm12, %v240_v28  ;;  %vm571_vm12 = vcmask 744448  }
  0x94   : > { %250 = vst.msk [vmem:[#allocation2 + $0x4] sm:$0xf] %vm249_vm13, %v247_v27  ;;  %vm448_vm13 = vcmask 891904  }
  0x95   : > { %v275_v29 = vpop.permute.xlu1 %274 }
  0x96   : > { %v254_v30 = vpop.permute.xlu0 %253  ;;  %v276_v31 = vrot.slane %v275_v29, 4 }
  0x97   : > { %257 = vst.msk [vmem:[#allocation2 + $0x4] sm:$0xf] %vm256_vm14, %v254_v30  ;;  %vm489_vm14 = vcmask 883712  }
  0x98   : > { %v278_v34 = vsel %vm277_vm2, %v276_v31, %v275_v29  ;;  %vm668_vm2 = vcmask 293888  }
  0x99   : > { %v268_v33 = vpop.permute.xlu1 %267 }
  0x9a   : > { %v261_v32 = vpop.permute.xlu0 %260 }
  0x9b   : > { %264 = vst.msk [vmem:[#allocation2 + $0x4] sm:$0xf] %vm263_vm1, %v261_v32  ;;  %vm325_vm1 = vcmask 1039360  }
  0x9c   : > { %271 = vst.msk [vmem:[#allocation2 + $0x4] sm:$0xf] %vm270_vm3, %v268_v33  ;;  %vm825_vm3 = vcmask 261120  }
  0x9d   : > { %283 = vst.msk [vmem:[#allocation2 + $0x4] sm:$0xff] %vm282_vm4, %v278_v34  ;;  %v294_v36 = vpop.permute.xlu1 %293 }
  0x9e   : > { %v287_v35 = vpop.permute.xlu0 %286 }
  0x9f   : > { %290 = vst.msk [vmem:[#allocation2 + $0x8] sm:$0xf] %vm289_vm5, %v287_v35 }
  0xa0   : > { %297 = vst.msk [vmem:[#allocation2 + $0x8] sm:$0xf] %vm296_vm6, %v294_v36 }
  0xa7   : > { %v618_v37 = vld [vmem:[#allocation2 + $0x1] ss:$4 sm:$0x7]  ;;  %v607_v38 = vld [vmem:[#allocation2] ss:$4 sm:$0x7] }
  0xa8   : > { %620 = vrot.lane.b32.xlu1 %v618_v37, %s979_s7  ;;  %609 = vrot.lane.b32.xlu0 %v607_v38, %s979_s7  ;;  %v638_v39 = vld [vmem:[#allocation2 + $0x3] ss:$4 sm:$0x7]  ;;  %v628_v40 = vld [vmem:[#allocation2 + $0x2] ss:$4 sm:$0x7] }
  0xa9   : > { %v536_v41 = vld [vmem:[#allocation2 + $0x1] ss:$4 sm:$0x7]  ;;  %v525_v42 = vld [vmem:[#allocation2] ss:$4 sm:$0x7] }
  0xaa   : > { %v556_v44 = vld [vmem:[#allocation2 + $0x3] ss:$4 sm:$0x7]  ;;  %v546_v45 = vld [vmem:[#allocation2 + $0x2] ss:$4 sm:$0x7] }
  0xab   : > { %v577_v47 = vld [vmem:[#allocation2 + $0x1] ss:$4 sm:$0x7]  ;;  %v566_v48 = vld [vmem:[#allocation2] ss:$4 sm:$0x7] }
  0xac   : > { %640 = vrot.lane.b32.xlu1 %v638_v39, %s979_s7  ;;  %630 = vrot.lane.b32.xlu0 %v628_v40, %s979_s7  ;;  %v298_v49 = vld [vmem:[#allocation2] ss:$4 sm:$0x7]  ;;  %v306_v50 = vld [vmem:[#allocation2 + $0x1] ss:$4 sm:$0x7] }
  0xad   : > { %303 = vst.msk [vmem:[#allocation3] ss:$8 sm:$0x7] %vm1045_vm7, %v298_v49  ;;  %v311_v51 = vld [vmem:[#allocation2 + $0x2] ss:$4 sm:$0x7] }
  0xae   : > { %308 = vst.msk [vmem:[#allocation3 + $0x1] ss:$8 sm:$0x7] %vm1045_vm7, %v306_v50  ;;  %313 = vst.msk [vmem:[#allocation3 + $0x2] ss:$8 sm:$0x7] %vm1045_vm7, %v311_v51 }
  0xaf   : > { %v316_v52 = vld [vmem:[#allocation2 + $0x3] ss:$4 sm:$0x7]  ;;  %v587_v54 = vld [vmem:[#allocation2 + $0x2] ss:$4 sm:$0x7] }
  0xb0   : > { %538 = vrot.lane.b32.xlu1 %v536_v41, %s980_s8  ;;  %527 = vrot.lane.b32.xlu0 %v525_v42, %s980_s8  ;;  %318 = vst.msk [vmem:[#allocation3 + $0x3] ss:$8 sm:$0x7] %vm1045_vm7, %v316_v52  ;;  %v597_v53 = vld [vmem:[#allocation2 + $0x3] ss:$4 sm:$0x7] }
  0xb1   : > { %v454_v55 = vld [vmem:[#allocation2 + $0x1] ss:$4 sm:$0x7]  ;;  %v443_v56 = vld [vmem:[#allocation2] ss:$4 sm:$0x7] }
  0xb2   : > { %v474_v57 = vld [vmem:[#allocation2 + $0x3] ss:$4 sm:$0x7]  ;;  %v464_v58 = vld [vmem:[#allocation2 + $0x2] ss:$4 sm:$0x7] }
  0xb3   : > { %v495_v59 = vld [vmem:[#allocation2 + $0x1] ss:$4 sm:$0x7]  ;;  %v484_v60 = vld [vmem:[#allocation2] ss:$4 sm:$0x7] }
  0xb4   : > { %558 = vrot.lane.b32.xlu1 %v556_v44, %s980_s8  ;;  %548 = vrot.lane.b32.xlu0 %v546_v45, %s980_s8  ;;  %v515_v61 = vld [vmem:[#allocation2 + $0x3] ss:$4 sm:$0x7]  ;;  %v505_v62 = vld [vmem:[#allocation2 + $0x2] ss:$4 sm:$0x7] }
  0xb5   : > { %v372_v63 = vld [vmem:[#allocation2 + $0x1] ss:$4 sm:$0x7]  ;;  %v361_v1 = vld [vmem:[#allocation2] ss:$4 sm:$0x7] }
  0xb6   : > { %v392_v2 = vld [vmem:[#allocation2 + $0x3] ss:$4 sm:$0x7]  ;;  %v382_v3 = vld [vmem:[#allocation2 + $0x2] ss:$4 sm:$0x7] }
  0xb7   : > { %v413_v4 = vld [vmem:[#allocation2 + $0x1] ss:$4 sm:$0x7]  ;;  %v402_v5 = vld [vmem:[#allocation2] ss:$4 sm:$0x7] }
  0xb8   : > { %579 = vrot.lane.b32.xlu1 %v577_v47, %s981_s9  ;;  %568 = vrot.lane.b32.xlu0 %v566_v48, %s981_s9  ;;  %v433_v6 = vld [vmem:[#allocation2 + $0x3] ss:$4 sm:$0x7]  ;;  %v423_v7 = vld [vmem:[#allocation2 + $0x2] ss:$4 sm:$0x7] }
  0xb9   : > { %v331_v8 = vld [vmem:[#allocation2 + $0x1] ss:$4 sm:$0x7]  ;;  %v320_v9 = vld [vmem:[#allocation2] ss:$4 sm:$0x7] }
  0xba   : > { %v351_v10 = vld [vmem:[#allocation2 + $0x3] ss:$4 sm:$0x7]  ;;  %v341_v11 = vld [vmem:[#allocation2 + $0x2] ss:$4 sm:$0x7] }
  0xbc   : > { %599 = vrot.lane.b32.xlu1 %v597_v53, %s981_s9  ;;  %589 = vrot.lane.b32.xlu0 %v587_v54, %s981_s9 }
  0xc0   : > { %456 = vrot.lane.b32.xlu1 %v454_v55, %s982_s10  ;;  %445 = vrot.lane.b32.xlu0 %v443_v56, %s982_s10 }
  0xc4   : > { %476 = vrot.lane.b32.xlu1 %v474_v57, %s982_s10  ;;  %466 = vrot.lane.b32.xlu0 %v464_v58, %s982_s10 }
  0xc8   : > { %497 = vrot.lane.b32.xlu1 %v495_v59, %s983_s11  ;;  %486 = vrot.lane.b32.xlu0 %v484_v60, %s983_s11 }
  0xcc   : > { %517 = vrot.lane.b32.xlu1 %v515_v61, %s983_s11  ;;  %507 = vrot.lane.b32.xlu0 %v505_v62, %s983_s11 }
  0xd0   : > { %374 = vrot.lane.b32.xlu1 %v372_v63, %s984_s14  ;;  %363 = vrot.lane.b32.xlu0 %v361_v1, %s984_s14 }
  0xd4   : > { %394 = vrot.lane.b32.xlu1 %v392_v2, %s984_s14  ;;  %384 = vrot.lane.b32.xlu0 %v382_v3, %s984_s14 }
  0xd8   : > { %415 = vrot.lane.b32.xlu1 %v413_v4, %s985_s15  ;;  %404 = vrot.lane.b32.xlu0 %v402_v5, %s985_s15 }
  0xdc   : > { %435 = vrot.lane.b32.xlu1 %v433_v6, %s985_s15  ;;  %425 = vrot.lane.b32.xlu0 %v423_v7, %s985_s15 }
  0xe0   : > { %333 = vrot.lane.b32.xlu1 %v331_v8, %s986_s16  ;;  %322 = vrot.lane.b32.xlu0 %v320_v9, %s986_s16 }
  0xe4   : > { %353 = vrot.lane.b32.xlu1 %v351_v10, %s986_s16  ;;  %343 = vrot.lane.b32.xlu0 %v341_v11, %s986_s16 }
  0xe8   : > { %665 = vperm.xlu0 %953, %v172_v13  }
 0x11a   : > { %v621_v14 = vpop.permute.xlu1 %620  ;;  %v610_v15 = vpop.permute.xlu0 %609 }
 0x11b   : > { %v622_v16 = vrot.slane %v621_v14, 1  ;;  %v611_v17 = vrot.slane %v610_v15, 1 }
 0x11d   : > { %v623_v18 = vsel %vm612_vm9, %v621_v14, %v622_v16  ;;  %v613_v19 = vsel %vm612_vm9, %v610_v15, %v611_v17 }
 0x11e   : > { %626 = vst.msk [vmem:[#allocation3 + $0x61] ss:$8 sm:$0x7] %vm1045_vm7, %v623_v18  ;;  %616 = vst.msk [vmem:[#allocation3 + $0x60] ss:$8 sm:$0x7] %vm1045_vm7, %v613_v19  ;;  %v641_v20 = vpop.permute.xlu1 %640  ;;  %v631_v21 = vpop.permute.xlu0 %630 }
 0x11f   : > { %v642_v22 = vrot.slane %v641_v20, 1  ;;  %v632_v23 = vrot.slane %v631_v21, 1 }
 0x121   : > { %v643_v24 = vsel %vm612_vm9, %v641_v20, %v642_v22  ;;  %v633_v25 = vsel %vm612_vm9, %v631_v21, %v632_v23 }
 0x122   : > { %646 = vst.msk [vmem:[#allocation3 + $0x63] ss:$8 sm:$0x7] %vm1045_vm7, %v643_v24  ;;  %636 = vst.msk [vmem:[#allocation3 + $0x62] ss:$8 sm:$0x7] %vm1045_vm7, %v633_v25  ;;  %v539_v26 = vpop.permute.xlu1 %538  ;;  %v528_v27 = vpop.permute.xlu0 %527 }
 0x123   : > { %v540_v28 = vrot.slane %v539_v26, 1  ;;  %v529_v29 = vrot.slane %v528_v27, 1 }
 0x125   : > { %v541_v30 = vsel %vm530_vm10, %v539_v26, %v540_v28  ;;  %v531_v31 = vsel %vm530_vm10, %v528_v27, %v529_v29 }
 0x126   : > { %544 = vst.msk [vmem:[#allocation3 + $0x49] ss:$8 sm:$0x7] %vm1045_vm7, %v541_v30  ;;  %534 = vst.msk [vmem:[#allocation3 + $0x48] ss:$8 sm:$0x7] %vm1045_vm7, %v531_v31  ;;  %v559_v32 = vpop.permute.xlu1 %558  ;;  %v549_v33 = vpop.permute.xlu0 %548 }
 0x127   : > { %v560_v34 = vrot.slane %v559_v32, 1  ;;  %v550_v35 = vrot.slane %v549_v33, 1 }
 0x129   : > { %v561_v36 = vsel %vm530_vm10, %v559_v32, %v560_v34  ;;  %v551_v37 = vsel %vm530_vm10, %v549_v33, %v550_v35  ;;  %v661_v38 = vld [vmem:[#allocation3 + $0x68] sm:$0xf]  ;;  %v662_v39 = vld [vmem:[#allocation3 + $0x70] sm:$0xf]  ;;  %v660_v40 = vld [vmem:[#allocation3 + $0x60] sm:$0xf] }
 0x12a   : > { %564 = vst.msk [vmem:[#allocation3 + $0x4b] ss:$8 sm:$0x7] %vm1045_vm7, %v561_v36  ;;  %554 = vst.msk [vmem:[#allocation3 + $0x4a] ss:$8 sm:$0x7] %vm1045_vm7, %v551_v37  ;;  %890 = vmatprep.subr.msk.mxu0 %vm672_vm11, %v661_v38  ;;  %905 = vmatpush3.msk.msra.mxu1 %vm672_vm11, %v662_v39  ;;  %v580_v41 = vpop.permute.xlu1 %579  ;;  %v569_v42 = vpop.permute.xlu0 %568 }
 0x12b   : > { %v581_v43 = vrot.slane %v580_v41, 1  ;;  %v570_v44 = vrot.slane %v569_v42, 1  ;;  %891 = vmatpush1.msk.msra.mxu0 %vm672_vm11, %v660_v40  ;;  %906 = vmatprep.subr.mxu1 %v962_v0 }
 0x12d   : > { %v582_v45 = vsel %vm571_vm12, %v580_v41, %v581_v43  ;;  %v572_v47 = vsel %vm571_vm12, %v569_v42, %v570_v44 }
 0x12e   : > { %585 = vst.msk [vmem:[#allocation3 + $0x4d] ss:$8 sm:$0x7] %vm1045_vm7, %v582_v45  ;;  %575 = vst.msk [vmem:[#allocation3 + $0x4c] ss:$8 sm:$0x7] %vm1045_vm7, %v572_v47  ;;  %v600_v48 = vpop.permute.xlu1 %599  ;;  %v590_v49 = vpop.permute.xlu0 %589 }
 0x12f   : > { %v601_v50 = vrot.slane %v600_v48, 1  ;;  %v591_v51 = vrot.slane %v590_v49, 1 }
 0x131   : > { %v602_v52 = vsel %vm571_vm12, %v600_v48, %v601_v50  ;;  %v592_v53 = vsel %vm571_vm12, %v590_v49, %v591_v51 }
 0x132   : > { %605 = vst.msk [vmem:[#allocation3 + $0x4f] ss:$8 sm:$0x7] %vm1045_vm7, %v602_v52  ;;  %595 = vst.msk [vmem:[#allocation3 + $0x4e] ss:$8 sm:$0x7] %vm1045_vm7, %v592_v53  ;;  %v457_v54 = vpop.permute.xlu1 %456  ;;  %v446_v55 = vpop.permute.xlu0 %445 }
 0x133   : > { %v458_v56 = vrot.slane %v457_v54, 1  ;;  %v447_v57 = vrot.slane %v446_v55, 1 }
 0x135   : > { %v459_v58 = vsel %vm448_vm13, %v457_v54, %v458_v56  ;;  %v449_v59 = vsel %vm448_vm13, %v446_v55, %v447_v57 }
 0x136   : > { %462 = vst.msk [vmem:[#allocation3 + $0x31] ss:$8 sm:$0x7] %vm1045_vm7, %v459_v58  ;;  %452 = vst.msk [vmem:[#allocation3 + $0x30] ss:$8 sm:$0x7] %vm1045_vm7, %v449_v59  ;;  %v477_v60 = vpop.permute.xlu1 %476  ;;  %v467_v61 = vpop.permute.xlu0 %466 }
 0x137   : > { %v478_v62 = vrot.slane %v477_v60, 1  ;;  %v468_v63 = vrot.slane %v467_v61, 1 }
 0x139   : > { %v479_v1 = vsel %vm448_vm13, %v477_v60, %v478_v62  ;;  %v469_v2 = vsel %vm448_vm13, %v467_v61, %v468_v63  ;;  %v658_v3 = vld [vmem:[#allocation3 + $0x50] sm:$0xff]  ;;  %v659_v4 = vld [vmem:[#allocation3 + $0x58] sm:$0xff]  ;;  %v657_v5 = vld [vmem:[#allocation3 + $0x48] sm:$0xff] }
 0x13a   : > { %482 = vst.msk [vmem:[#allocation3 + $0x33] ss:$8 sm:$0x7] %vm1045_vm7, %v479_v1  ;;  %472 = vst.msk [vmem:[#allocation3 + $0x32] ss:$8 sm:$0x7] %vm1045_vm7, %v469_v2  ;;  %706 = vmatprep.subr.mxu0 %v658_v3  ;;  %907 = vmatpush3.msra.mxu1 %v659_v4  ;;  %v498_v6 = vpop.permute.xlu1 %497  ;;  %v487_v7 = vpop.permute.xlu0 %486 }
 0x13b   : > { %v499_v8 = vrot.slane %v498_v6, 1  ;;  %v488_v9 = vrot.slane %v487_v7, 1  ;;  %707 = vmatpush1.msra.mxu0 %v657_v5  ;;  %908 = vmatprep.subr.mxu1 %v962_v0  ;;  %v171_v61 = vld [vmem:[%s1152_s1] sm:$0xff] }
 0x13d   : > { %v500_v10 = vsel %vm489_vm14, %v498_v6, %v499_v8  ;;  %v490_v11 = vsel %vm489_vm14, %v487_v7, %v488_v9 }
 0x13e   : > { %503 = vst.msk [vmem:[#allocation3 + $0x35] ss:$8 sm:$0x7] %vm1045_vm7, %v500_v10  ;;  %493 = vst.msk [vmem:[#allocation3 + $0x34] ss:$8 sm:$0x7] %vm1045_vm7, %v490_v11  ;;  %v518_v12 = vpop.permute.xlu1 %517  ;;  %v508_v13 = vpop.permute.xlu0 %507 }
 0x13f   : > { %v519_v14 = vrot.slane %v518_v12, 1  ;;  %v509_v15 = vrot.slane %v508_v13, 1 }
 0x141   : > { %v520_v16 = vsel %vm489_vm14, %v518_v12, %v519_v14  ;;  %v510_v17 = vsel %vm489_vm14, %v508_v13, %v509_v15 }
 0x142   : > { %523 = vst.msk [vmem:[#allocation3 + $0x37] ss:$8 sm:$0x7] %vm1045_vm7, %v520_v16  ;;  %513 = vst.msk [vmem:[#allocation3 + $0x36] ss:$8 sm:$0x7] %vm1045_vm7, %v510_v17  ;;  %v375_v18 = vpop.permute.xlu1 %374  ;;  %v364_v19 = vpop.permute.xlu0 %363 }
 0x143   : > { %v376_v20 = vrot.slane %v375_v18, 1  ;;  %v365_v21 = vrot.slane %v364_v19, 1 }
 0x145   : > { %v377_v22 = vsel %vm366_vm15, %v375_v18, %v376_v20  ;;  %v367_v23 = vsel %vm366_vm15, %v364_v19, %v365_v21 }
 0x146   : > { %380 = vst.msk [vmem:[#allocation3 + $0x19] ss:$8 sm:$0x7] %vm1045_vm7, %v377_v22  ;;  %370 = vst.msk [vmem:[#allocation3 + $0x18] ss:$8 sm:$0x7] %vm1045_vm7, %v367_v23  ;;  %v395_v24 = vpop.permute.xlu1 %394  ;;  %v385_v25 = vpop.permute.xlu0 %384 }
 0x147   : > { %v396_v26 = vrot.slane %v395_v24, 1  ;;  %v386_v27 = vrot.slane %v385_v25, 1 }
 0x149   : > { %v397_v28 = vsel %vm366_vm15, %v395_v24, %v396_v26  ;;  %v387_v29 = vsel %vm366_vm15, %v385_v25, %v386_v27  ;;  %v655_v30 = vld [vmem:[#allocation3 + $0x38] sm:$0xff]  ;;  %v656_v31 = vld [vmem:[#allocation3 + $0x40] sm:$0xff]  ;;  %v654_v32 = vld [vmem:[#allocation3 + $0x30] sm:$0xff] }
 0x14a   : > { %400 = vst.msk [vmem:[#allocation3 + $0x1b] ss:$8 sm:$0x7] %vm1045_vm7, %v397_v28  ;;  %390 = vst.msk [vmem:[#allocation3 + $0x1a] ss:$8 sm:$0x7] %vm1045_vm7, %v387_v29  ;;  %708 = vmatprep.subr.mxu0 %v655_v30  ;;  %909 = vmatpush3.msra.mxu1 %v656_v31  ;;  %v416_v33 = vpop.permute.xlu1 %415  ;;  %v405_v34 = vpop.permute.xlu0 %404 }
 0x14b   : > { %v417_v35 = vrot.slane %v416_v33, 1  ;;  %v406_v36 = vrot.slane %v405_v34, 1  ;;  %709 = vmatpush1.msra.mxu0 %v654_v32  ;;  %910 = vmatprep.subr.mxu1 %v962_v0 }
 0x14d   : > { %v418_v37 = vsel %vm407_vm0, %v416_v33, %v417_v35  ;;  %v408_v38 = vsel %vm407_vm0, %v405_v34, %v406_v36 }
 0x14e   : > { %421 = vst.msk [vmem:[#allocation3 + $0x1d] ss:$8 sm:$0x7] %vm1045_vm7, %v418_v37  ;;  %411 = vst.msk [vmem:[#allocation3 + $0x1c] ss:$8 sm:$0x7] %vm1045_vm7, %v408_v38  ;;  %v436_v39 = vpop.permute.xlu1 %435  ;;  %v426_v40 = vpop.permute.xlu0 %425 }
 0x14f   : > { %v437_v41 = vrot.slane %v436_v39, 1  ;;  %v427_v42 = vrot.slane %v426_v40, 1 }
 0x151   : > { %v438_v43 = vsel %vm407_vm0, %v436_v39, %v437_v41  ;;  %v428_v44 = vsel %vm407_vm0, %v426_v40, %v427_v42 }
 0x152   : > { %441 = vst.msk [vmem:[#allocation3 + $0x1f] ss:$8 sm:$0x7] %vm1045_vm7, %v438_v43  ;;  %431 = vst.msk [vmem:[#allocation3 + $0x1e] ss:$8 sm:$0x7] %vm1045_vm7, %v428_v44  ;;  %v334_v45 = vpop.permute.xlu1 %333  ;;  %v323_v47 = vpop.permute.xlu0 %322 }
 0x153   : > { %v335_v48 = vrot.slane %v334_v45, 1  ;;  %v324_v49 = vrot.slane %v323_v47, 1 }
 0x155   : > { %v336_v50 = vsel %vm325_vm1, %v334_v45, %v335_v48  ;;  %v326_v51 = vsel %vm325_vm1, %v323_v47, %v324_v49 }
 0x156   : > { %339 = vst.msk [vmem:[#allocation3 + $0x5] ss:$8 sm:$0x7] %vm1045_vm7, %v336_v50  ;;  %329 = vst.msk [vmem:[#allocation3 + $0x4] ss:$8 sm:$0x7] %vm1045_vm7, %v326_v51  ;;  %v354_v52 = vpop.permute.xlu1 %353  ;;  %v344_v53 = vpop.permute.xlu0 %343 }
 0x157   : > { %v355_v54 = vrot.slane %v354_v52, 1  ;;  %v345_v55 = vrot.slane %v344_v53, 1 }
 0x159   : > { %v356_v56 = vsel %vm325_vm1, %v354_v52, %v355_v54  ;;  %v346_v57 = vsel %vm325_vm1, %v344_v53, %v345_v55  ;;  %v652_v58 = vld [vmem:[#allocation3 + $0x20] sm:$0xff]  ;;  %v653_v59 = vld [vmem:[#allocation3 + $0x28] sm:$0xff]  ;;  %v651_v60 = vld [vmem:[#allocation3 + $0x18] sm:$0xff] }
 0x15a   : > { %359 = vst.msk [vmem:[#allocation3 + $0x7] ss:$8 sm:$0x7] %vm1045_vm7, %v356_v56  ;;  %349 = vst.msk [vmem:[#allocation3 + $0x6] ss:$8 sm:$0x7] %vm1045_vm7, %v346_v57  ;;  %710 = vmatprep.subr.mxu0 %v652_v58  ;;  %911 = vmatpush3.msra.mxu1 %v653_v59 }
 0x15b   : > { %711 = vmatpush1.msra.mxu0 %v651_v60  ;;  %912 = vmatprep.subr.mxu1 %v962_v0 }
 0x161   : > { %v649_v62 = vld [vmem:[#allocation3 + $0x8] sm:$0xff]  ;;  %v650_v63 = vld [vmem:[#allocation3 + $0x10] sm:$0xff]  ;;  %v648_v1 = vld [vmem:[#allocation3] sm:$0xff] }
 0x162   : > { %712 = vmatprep.subr.mxu0 %v649_v62  ;;  %913 = vmatpush3.msra.mxu1 %v650_v63 }
 0x163   : > { %713 = vmatpush1.msra.mxu0 %v648_v1  ;;  %915 = vmatmul.mubr.msk.f32.vlgmr.msra.gmra.mxu1 %vm668_vm2, %v171_v61  ;;  %v666_v46 = vpop.permute.xlu0 %665 }
 0x164   : > { %892 = vmatmul.mubr.msk.f32.vlgmr.msra.gmra.mxu0 %vm668_vm2, %v171_v61 }
 0x223   : > { %v819_v2 = vpop.f32.mrf.mxu1 }
 0x224   : > { %v748_v0 = vpop.f32.mrf.mxu0  ;;  %v820_v3 = vadd.f32 %v819_v2, %v666_v46 }
 0x225   : > { %v749_v4 = vadd.f32 %v748_v0, %v666_v46  ;;  %v916_v5 = vpop.f32.mrf.mxu1 }
 0x226   : > { %826 = vst.msk [vmem:[%s170_s24 + $0x10] sm:$0xff] %vm825_vm3, %v820_v3  ;;  %v750_v6 = vpop.f32.mrf.mxu0 }
 0x227   : > { %823 = vst [vmem:[%s170_s24] sm:$0xff] %v749_v4  ;;  %v751_v7 = vadd.f32 %v750_v6, %v666_v46 }
 0x229   : > { %824 = vst [vmem:[%s170_s24 + $0x8] sm:$0xff] %v751_v7 }
 0x22a PF: > { %s13_s12 = sadd.s32 1, %s960_s12  }
 0x22b   : > { %p10_p4 = scmp.ge.s32.totalorder %s13_s12, 4  }
 0x22d   :  { %12 = sbr.rel (!%p10_p4) target bundleno = 1 (0x1), region = 100 }

</bundles_post_ra>
